<compile_context>
chip_gen: v6e
topology: v6e:2x2x1
jax: 0.10.0
libtpu: 0.0.40
codegen_flags: <defaults>
</compile_context>

<pallas_src>
import jax
import jax.numpy as jnp
from jax.experimental import pallas as pl
from jax.experimental.pallas import tpu as pltpu

HID = 64      # gcn_hidden_dim == experimental_hidden_dim
COMB = 128    # combined_hidden_dim


def _round_up(x, m):
    return (x + m - 1) // m * m


def _choose_tiling(n):
    """Pad node count to a lane-aligned size; pick decoupled row/K tiles."""
    n_pad = _round_up(max(n, 1), 128)

    def pick(cap):
        t = min(cap, n_pad)
        while n_pad % t:
            t -= 128
        return t

    tm = pick(256)     # output-row tile (accumulator rows)
    tk = pick(1024)    # reduction tile over A columns (large -> few k steps)
    return n_pad, tm, tk


# ---------------------------------------------------------------------------
# Fused kernel: 3x (propagate + transform + BN + ReLU) + mean pool + MLP head
#   grid = (layer, row block, K block), all "arbitrary" (sequential deps).
# ---------------------------------------------------------------------------
def fused_gnn_kernel(a_ref, dis_ref, g1_ref, w_ref, b_ref, pool_ref,
                     ef_ref, we1_ref, be1_ref, we2_ref, be2_ref,
                     wf1x_ref, wf1e_ref, bf1_ref, wf2_ref, bf2_ref,
                     out_ref, pooled_out_ref, comb_ref,
                     g_even_ref, g_odd_ref, acc_ref, pooled_ref):
    l = pl.program_id(0)          # layer index (0..2)
    i = pl.program_id(1)          # output-row block
    k = pl.program_id(2)          # reduction block over A columns
    nl = pl.num_programs(0)
    ni = pl.num_programs(1)
    nk = pl.num_programs(2)
    tm, tk = a_ref.shape

    # One-time init at the very first grid step: seed the ping buffer with the
    # pre-scaled input features g1 = D^-1/2 x (zero-padded to HID columns).
    @pl.when((l == 0) & (i == 0) & (k == 0))
    def _init():
        g_even_ref[...] = g1_ref[...]
        g_odd_ref[...] = jnp.zeros_like(g_odd_ref)
        pooled_ref[...] = jnp.zeros_like(pooled_ref)

    @pl.when(k == 0)
    def _zero_acc():
        acc_ref[...] = jnp.zeros_like(acc_ref)

    # Propagation: binary (A+I) block (int8, streamed from HBM) @ scaled h.
    # Layers 0 and 2 read the even buffer, layer 1 reads the odd buffer.
    kstart = pl.multiple_of(k * tk, tk)
    g_e = g_even_ref[pl.ds(kstart, tk), :]
    g_o = g_odd_ref[pl.ds(kstart, tk), :]
    rhs = jnp.where(l == 1, g_o, g_e)
    a_blk = a_ref[...].astype(jnp.float32).astype(jnp.bfloat16)   # exact: 0/1
    acc_ref[...] += jnp.dot(a_blk, rhs, preferred_element_type=jnp.float32)

    # Finalize this (layer, row block): post-scale, folded-BN transform, ReLU,
    # hand the scaled result to the next layer; on the last layer fuse the
    # mean pooling and (at the very last step) the MLP head.
    @pl.when(k == nk - 1)
    def _finalize():
        dis = dis_ref[...]                                     # (tm, 1) f32
        prop = (acc_ref[...] * dis).astype(jnp.bfloat16)       # = A_norm @ h
        w = jnp.where(l == 0, w_ref[0],
                      jnp.where(l == 1, w_ref[1], w_ref[2]))
        b = jnp.where(l == 0, b_ref[0],
                      jnp.where(l == 1, b_ref[1], b_ref[2]))
        z = jnp.dot(prop, w, preferred_element_type=jnp.float32) + b
        h_new = jnp.maximum(z, 0.0)                            # (tm, HID) f32

        row = pl.multiple_of(i * tm, tm)
        g_next = (h_new * dis).astype(jnp.bfloat16)            # scaled hand-off

        @pl.when(l == 0)
        def _store_layer0():
            g_odd_ref[pl.ds(row, tm), :] = g_next

        @pl.when(l == 1)
        def _store_layer1():
            g_even_ref[pl.ds(row, tm), :] = g_next

        @pl.when(l == nl - 1)
        def _pool():
            # global_mean_pool fused: pooled += P_rowblock @ h_block
            pooled_ref[...] += jnp.dot(pool_ref[...],
                                       h_new.astype(jnp.bfloat16),
                                       preferred_element_type=jnp.float32)

        @pl.when((l == nl - 1) & (i == ni - 1))
        def _head():
            # Experimental-feature MLP + fc1(concat) + fc2 (dropout = identity
            # in eval).  Runs exactly once, at the last grid step.
            pooled = pooled_ref[...]                           # (B, HID) f32
            e = jnp.dot(ef_ref[...], we1_ref[...],
                        preferred_element_type=jnp.float32) + be1_ref[...]
            e = jnp.maximum(e, 0.0)
            e = jnp.dot(e, we2_ref[...],
                        preferred_element_type=jnp.float32) + be2_ref[...]
            e = jnp.maximum(e, 0.0)
            c = (jnp.dot(pooled, wf1x_ref[...], preferred_element_type=jnp.float32)
                 + jnp.dot(e, wf1e_ref[...], preferred_element_type=jnp.float32)
                 + bf1_ref[...])
            c = jnp.maximum(c, 0.0)
            o = jnp.dot(c, wf2_ref[...],
                        preferred_element_type=jnp.float32) + bf2_ref[...]
            out_ref[...] = o
            pooled_out_ref[...] = pooled
            comb_ref[...] = c


# ---------------------------------------------------------------------------
# One-time (hoisted) preparation of graph tensors and parameters.
# ---------------------------------------------------------------------------
def prepare_graph(x, adj_bin, d_inv_sqrt, pool):
    """adj_bin = (A + I) binary; d_inv_sqrt from deg(A + I); pool = (B, N)."""
    N, F = x.shape
    assert F <= HID
    n_pad, tm, tk = _choose_tiling(N)
    B = pool.shape[0]

    a_i8 = jnp.zeros((n_pad, n_pad), jnp.int8).at[:N, :N].set(
        adj_bin.astype(jnp.int8))
    dis = jnp.zeros((n_pad, 1), jnp.float32).at[:N, 0].set(
        d_inv_sqrt.astype(jnp.float32))
    x_pad = jnp.zeros((n_pad, HID), jnp.float32).at[:N, :F].set(
        x.astype(jnp.float32))
    g1 = (x_pad * dis).astype(jnp.bfloat16)          # D^-1/2 x, padded, bf16
    pool_bf = jnp.zeros((B, n_pad), jnp.bfloat16).at[:, :N].set(
        pool.astype(jnp.bfloat16))
    return {"a": a_i8, "dis": dis, "g1": g1, "pool": pool_bf,
            "n_pad": n_pad, "tm": tm, "tk": tk, "B": B}


def prepare_params(p, input_dim):
    """Fold BatchNorm (eval) into each GCN layer, pad W1 in-rows to HID,
    stack + cast to bf16.  Done once per checkpoint, not per forward."""
    assert input_dim <= HID

    def fold(w, b, s, t):
        # y = (x @ w + b) * s + t == x @ (w * s) + (b * s + t)   (exact, eval)
        return w * s, b * s + t

    w1, b1 = fold(p["w1"], p["b1"], p["s1"], p["t1"])
    w2, b2 = fold(p["w2"], p["b2"], p["s2"], p["t2"])
    w3, b3 = fold(p["w3"], p["b3"], p["s3"], p["t3"])
    w1p = jnp.zeros((HID, HID), jnp.float32).at[:input_dim, :].set(w1)
    w_stack = jnp.stack([w1p, w2, w3]).astype(jnp.bfloat16)     # (3, HID, HID)
    b_stack = jnp.stack([b1, b2, b3]).astype(jnp.float32)       # (3, 1, HID)
    return {"w_stack": w_stack, "b_stack": b_stack,
            "we1": p["we1"], "be1": p["be1"],
            "we2": p["we2"], "be2": p["be2"],
            "wf1x": p["wf1x"], "wf1e": p["wf1e"], "bf1": p["bf1"],
            "wf2": p["wf2"], "bf2": p["bf2"]}


def gnn_forward(graph, exp_feat, pp):
    n_pad, tm, tk, B = graph["n_pad"], graph["tm"], graph["tk"], graph["B"]
    n_layers = pp["w_stack"].shape[0]
    E = exp_feat.shape[1]
    grid = (n_layers, n_pad // tm, n_pad // tk)

    def full(shape):
        return pl.BlockSpec(shape, lambda l, i, k: (0,) * len(shape))

    in_specs = [
        pl.BlockSpec((tm, tk), lambda l, i, k: (i, k)),     # A+I binary (int8)
        pl.BlockSpec((tm, 1), lambda l, i, k: (i, 0)),      # D^-1/2 row scales
        full((n_pad, HID)),                                 # g1 = D^-1/2 x
        full((n_layers, HID, HID)),                         # folded W stack
        full((n_layers, 1, HID)),                           # folded b stack
        pl.BlockSpec((B, tm), lambda l, i, k: (0, i)),      # mean-pool matrix
        full((B, E)),                                       # experimental feat
        full(pp["we1"].shape), full(pp["be1"].shape),
        full(pp["we2"].shape), full(pp["be2"].shape),
        full(pp["wf1x"].shape), full(pp["wf1e"].shape), full(pp["bf1"].shape),
        full(pp["wf2"].shape), full(pp["bf2"].shape),
    ]
    out_specs = [full((B, 1)), full((B, HID)), full((B, COMB))]
    out_shape = (jax.ShapeDtypeStruct((B, 1), jnp.float32),
                 jax.ShapeDtypeStruct((B, HID), jnp.float32),
                 jax.ShapeDtypeStruct((B, COMB), jnp.float32))
    scratch = [
        pltpu.VMEM((n_pad, HID), jnp.bfloat16),   # g (even layers' input)
        pltpu.VMEM((n_pad, HID), jnp.bfloat16),   # g (odd layer's input)
        pltpu.VMEM((tm, HID), jnp.float32),       # propagation accumulator
        pltpu.VMEM((B, HID), jnp.float32),        # fused mean-pool accumulator
    ]
    return pl.pallas_call(
        fused_gnn_kernel,
        out_shape=out_shape,
        grid_spec=pltpu.PrefetchScalarGridSpec(
            num_scalar_prefetch=0, grid=grid,
            in_specs=in_specs, out_specs=out_specs, scratch_shapes=scratch),
        compiler_params=pltpu.CompilerParams(
            dimension_semantics=("arbitrary", "arbitrary", "arbitrary"),
            vmem_limit_bytes=48 * 1024 * 1024),
    )(graph["a"], graph["dis"], graph["g1"], pp["w_stack"], pp["b_stack"],
      graph["pool"], exp_feat, pp["we1"], pp["be1"], pp["we2"], pp["be2"],
      pp["wf1x"], pp["wf1e"], pp["bf1"], pp["wf2"], pp["bf2"])


# ---------------------------------------------------------------------------
# Parameter / graph construction and a pure-JAX f32 reference.
# ---------------------------------------------------------------------------
def make_params(key, input_dim, experimental_input_dim,
                gcn_hidden_dim=HID, experimental_hidden_dim=HID,
                combined_hidden_dim=COMB):
    ks = jax.random.split(key, 16)

    def lin(k, fan_in, fan_out):
        # stored as (in, out) so y = x @ W + b (== PyTorch x @ W.T + b)
        return 0.1 * jax.random.normal(k, (fan_in, fan_out), jnp.float32)

    def bias(k, fan_out):
        return 0.1 * jax.random.normal(k, (1, fan_out), jnp.float32)

    eps = 1e-5

    def bn(kg, kb, dim):
        # BatchNorm1d eval with running_mean=0, running_var=1 (defaults).
        gamma = 1.0 + 0.05 * jax.random.normal(kg, (1, dim), jnp.float32)
        beta = 0.05 * jax.random.normal(kb, (1, dim), jnp.float32)
        return gamma / jnp.sqrt(1.0 + eps), beta

    p = {}
    p["w1"] = lin(ks[0], input_dim, gcn_hidden_dim)
    p["b1"] = bias(ks[1], gcn_hidden_dim)
    p["s1"], p["t1"] = bn(ks[2], ks[3], gcn_hidden_dim)
    p["w2"] = lin(ks[4], gcn_hidden_dim, gcn_hidden_dim)
    p["b2"] = bias(ks[5], gcn_hidden_dim)
    p["s2"], p["t2"] = bn(ks[6], ks[7], gcn_hidden_dim)
    p["w3"] = lin(ks[8], gcn_hidden_dim, gcn_hidden_dim)
    p["b3"] = bias(ks[9], gcn_hidden_dim)
    p["s3"], p["t3"] = bn(ks[10], ks[11], gcn_hidden_dim)
    p["we1"] = lin(ks[12], experimental_input_dim, experimental_hidden_dim)
    p["be1"] = bias(ks[13], experimental_hidden_dim)
    p["we2"] = lin(ks[14], experimental_hidden_dim, experimental_hidden_dim)
    p["be2"] = bias(ks[15], experimental_hidden_dim)

    ks2 = jax.random.split(jax.random.fold_in(key, 123), 4)
    wf1 = lin(ks2[0], gcn_hidden_dim + experimental_hidden_dim,
              combined_hidden_dim)
    p["wf1x"] = wf1[:gcn_hidden_dim, :]
    p["wf1e"] = wf1[gcn_hidden_dim:, :]
    p["bf1"] = bias(ks2[1], combined_hidden_dim)
    p["wf2"] = lin(ks2[2], combined_hidden_dim, 1)
    p["bf2"] = bias(ks2[3], 1)
    return p


def build_graph(key, num_nodes, num_edges, input_dim, num_graphs):
    kx, ks, kd = jax.random.split(key, 3)
    x = jax.random.normal(kx, (num_nodes, input_dim), jnp.float32)
    src = jax.random.randint(ks, (num_edges,), 0, num_nodes)
    dst = jax.random.randint(kd, (num_edges,), 0, num_nodes)

    # dense binary adjacency (undirected) with self loops, GCN normalization
    adj = jnp.zeros((num_nodes, num_nodes), jnp.float32).at[src, dst].set(1.0)
    adj = jnp.maximum(adj, adj.T)
    adj_bin = jnp.maximum(adj, jnp.eye(num_nodes, dtype=jnp.float32))  # A + I
    deg = adj_bin.sum(axis=1)
    d_inv_sqrt = 1.0 / jnp.sqrt(deg)
    a_norm = adj_bin * d_inv_sqrt[:, None] * d_inv_sqrt[None, :]

    # batch assignment: contiguous equal-size graphs -> mean-pooling matrix
    nodes_per_graph = num_nodes // num_graphs
    batch = jnp.repeat(jnp.arange(num_graphs), nodes_per_graph)
    onehot = (batch[None, :] == jnp.arange(num_graphs)[:, None]).astype(jnp.float32)
    pool = onehot / onehot.sum(axis=1, keepdims=True)
    return x, adj_bin, d_inv_sqrt, a_norm, pool


def reference_forward(a_norm, x, pool, exp_feat, p):
    def layer(h, w, b, s, t):
        h = a_norm @ (h @ w) + b
        h = h * s + t
        return jnp.maximum(h, 0.0)

    h = layer(x, p["w1"], p["b1"], p["s1"], p["t1"])
    h = layer(h, p["w2"], p["b2"], p["s2"], p["t2"])
    h = layer(h, p["w3"], p["b3"], p["s3"], p["t3"])
    pooled = pool @ h
    e = jnp.maximum(exp_feat @ p["we1"] + p["be1"], 0.0)
    e = jnp.maximum(e @ p["we2"] + p["be2"], 0.0)
    c = jnp.maximum(pooled @ p["wf1x"] + e @ p["wf1e"] + p["bf1"], 0.0)
    out = c @ p["wf2"] + p["bf2"]
    return out, pooled, c


if __name__ == "__main__":
    key = jax.random.PRNGKey(0)
    k_graph, k_exp, k_params = jax.random.split(key, 3)

    # small shapes consistent with the module
    input_dim = 16                 # node feature dim
    experimental_input_dim = 8     # experimental feature dim
    num_nodes = 32                 # total nodes across the batch
    num_edges = 64
    num_graphs = 2                 # batch of 2 graphs

    x, adj_bin, d_inv_sqrt, a_norm, pool = build_graph(
        k_graph, num_nodes, num_edges, input_dim, num_graphs)
    exp_feat = jax.random.normal(k_exp, (num_graphs, experimental_input_dim),
                                 jnp.float32)
    params = make_params(k_params, input_dim, experimental_input_dim)

    # Hoisted one-time prep (review: do NOT redo pad/cast/fold every forward).
    graph = prepare_graph(x, adj_bin, d_inv_sqrt, pool)
    pparams = prepare_params(params, input_dim)

    # TODO(synk): dropout(p=0.1) is identity in eval mode; no stochastic mask.
    # TODO(synk): real sparse graphs (E << N^2) would want a blocked-sparse /
    #             gather-based propagation instead of the dense (A+I) matmul.
    out, pooled_x, combined = gnn_forward(graph, exp_feat, pparams)
    jax.block_until_ready((out, pooled_x, combined))

    assert out.shape == (num_graphs, 1)
    assert pooled_x.shape == (num_graphs, HID)
    assert combined.shape == (num_graphs, COMB)

    # pure-JAX f32 reference (loose tolerance: h hand-off is bf16 in-kernel)
    ref_out, ref_pooled, ref_combined = reference_forward(
        a_norm, x, pool, exp_feat, params)
    assert jnp.allclose(out, ref_out, rtol=5e-2, atol=5e-2)
    assert jnp.allclose(pooled_x, ref_pooled, rtol=5e-2, atol=5e-2)
    assert jnp.allclose(combined, ref_combined, rtol=5e-2, atol=5e-2)

    print("KERNEL_OK")
</pallas_src>

<mosaic_0001>
module attributes {stable_mosaic.version = 11 : i64} {
  func.func @fused_gnn_kernel(%arg0: i32, %arg1: i32, %arg2: i32, %arg3: memref<128x128xi8, #tpu.memory_space<vmem>>, %arg4: memref<128x1xf32, #tpu.memory_space<vmem>>, %arg5: memref<128x64xbf16, #tpu.memory_space<vmem>>, %arg6: memref<3x64x64xbf16, #tpu.memory_space<vmem>>, %arg7: memref<3x1x64xf32, #tpu.memory_space<vmem>>, %arg8: memref<2x128xbf16, #tpu.memory_space<vmem>>, %arg9: memref<2x8xf32, #tpu.memory_space<vmem>>, %arg10: memref<8x64xf32, #tpu.memory_space<vmem>>, %arg11: memref<1x64xf32, #tpu.memory_space<vmem>>, %arg12: memref<64x64xf32, #tpu.memory_space<vmem>>, %arg13: memref<1x64xf32, #tpu.memory_space<vmem>>, %arg14: memref<64x128xf32, #tpu.memory_space<vmem>>, %arg15: memref<64x128xf32, #tpu.memory_space<vmem>>, %arg16: memref<1x128xf32, #tpu.memory_space<vmem>>, %arg17: memref<128x1xf32, #tpu.memory_space<vmem>>, %arg18: memref<1x1xf32, #tpu.memory_space<vmem>>, %arg19: memref<2x1xf32, #tpu.memory_space<vmem>>, %arg20: memref<2x64xf32, #tpu.memory_space<vmem>>, %arg21: memref<2x128xf32, #tpu.memory_space<vmem>>, %arg22: memref<128x64xbf16, #tpu.memory_space<vmem>>, %arg23: memref<128x64xbf16, #tpu.memory_space<vmem>>, %arg24: memref<128x64xf32, #tpu.memory_space<vmem>>, %arg25: memref<2x64xf32, #tpu.memory_space<vmem>>) attributes {dimension_semantics = [#tpu.dimension_semantics<arbitrary>, #tpu.dimension_semantics<arbitrary>, #tpu.dimension_semantics<arbitrary>], iteration_bounds = array<i64: 3, 1, 1>, scalar_prefetch = 0 : i64, scratch_operands = 4 : i64, tpu.core_type = #tpu.core_type<tc>, window_params = [{transform_indices = @transform_0, window_bounds = array<i64: 128, 128>}, {transform_indices = @transform_1, window_bounds = array<i64: 128, 1>}, {pipeline_mode = #tpu.pipeline_mode<synchronous>, transform_indices = @transform_2, window_bounds = array<i64: 128, 64>}, {pipeline_mode = #tpu.pipeline_mode<synchronous>, transform_indices = @transform_3, window_bounds = array<i64: 3, 64, 64>}, {pipeline_mode = #tpu.pipeline_mode<synchronous>, transform_indices = @transform_4, window_bounds = array<i64: 3, 1, 64>}, {transform_indices = @transform_5, window_bounds = array<i64: 2, 128>}, {pipeline_mode = #tpu.pipeline_mode<synchronous>, transform_indices = @transform_6, window_bounds = array<i64: 2, 8>}, {pipeline_mode = #tpu.pipeline_mode<synchronous>, transform_indices = @transform_7, window_bounds = array<i64: 8, 64>}, {pipeline_mode = #tpu.pipeline_mode<synchronous>, transform_indices = @transform_8, window_bounds = array<i64: 1, 64>}, {pipeline_mode = #tpu.pipeline_mode<synchronous>, transform_indices = @transform_9, window_bounds = array<i64: 64, 64>}, {pipeline_mode = #tpu.pipeline_mode<synchronous>, transform_indices = @transform_10, window_bounds = array<i64: 1, 64>}, {pipeline_mode = #tpu.pipeline_mode<synchronous>, transform_indices = @transform_11, window_bounds = array<i64: 64, 128>}, {pipeline_mode = #tpu.pipeline_mode<synchronous>, transform_indices = @transform_12, window_bounds = array<i64: 64, 128>}, {pipeline_mode = #tpu.pipeline_mode<synchronous>, transform_indices = @transform_13, window_bounds = array<i64: 1, 128>}, {pipeline_mode = #tpu.pipeline_mode<synchronous>, transform_indices = @transform_14, window_bounds = array<i64: 128, 1>}, {pipeline_mode = #tpu.pipeline_mode<synchronous>, transform_indices = @transform_15, window_bounds = array<i64: 1, 1>}, {pipeline_mode = #tpu.pipeline_mode<synchronous>, transform_indices = @transform_16, window_bounds = array<i64: 2, 1>}, {pipeline_mode = #tpu.pipeline_mode<synchronous>, transform_indices = @transform_17, window_bounds = array<i64: 2, 64>}, {pipeline_mode = #tpu.pipeline_mode<synchronous>, transform_indices = @transform_18, window_bounds = array<i64: 2, 128>}]} {
    %c0_i32 = arith.constant 0 : i32
    %0 = arith.cmpi eq, %arg0, %c0_i32 : i32
    %c0_i32_0 = arith.constant 0 : i32
    %1 = arith.cmpi eq, %arg1, %c0_i32_0 : i32
    %2 = arith.andi %0, %1 : i1
    %c0_i32_1 = arith.constant 0 : i32
    %3 = arith.cmpi eq, %arg2, %c0_i32_1 : i32
    %4 = arith.andi %2, %3 : i1
    %5 = arith.extui %4 : i1 to i32
    %c0_i32_2 = arith.constant 0 : i32
    %6 = arith.cmpi ne, %5, %c0_i32_2 : i32
    scf.if %6 {
      %c0_14 = arith.constant 0 : index
      %c0_15 = arith.constant 0 : index
      %28 = vector.load %arg5[%c0_14, %c0_15] : memref<128x64xbf16, #tpu.memory_space<vmem>>, vector<128x64xbf16>
      %c0_16 = arith.constant 0 : index
      %c0_17 = arith.constant 0 : index
      %29 = vector.load %arg22[%c0_16, %c0_17] : memref<128x64xbf16, #tpu.memory_space<vmem>>, vector<128x64xbf16>
      tpu.vector_store %arg22[%c0_16, %c0_17], %28 {strides = array<i32>} : memref<128x64xbf16, #tpu.memory_space<vmem>>, vector<128x64xbf16>,
      %cst_18 = arith.constant 0.000000e+00 : bf16
      %30 = vector.broadcast %cst_18 : bf16 to vector<128x64xbf16>
      %c0_19 = arith.constant 0 : index
      %c0_20 = arith.constant 0 : index
      %31 = vector.load %arg23[%c0_19, %c0_20] : memref<128x64xbf16, #tpu.memory_space<vmem>>, vector<128x64xbf16>
      tpu.vector_store %arg23[%c0_19, %c0_20], %30 {strides = array<i32>} : memref<128x64xbf16, #tpu.memory_space<vmem>>, vector<128x64xbf16>,
      %cst_21 = arith.constant 0.000000e+00 : f32
      %32 = vector.broadcast %cst_21 : f32 to vector<2x64xf32>
      %c0_22 = arith.constant 0 : index
      %c0_23 = arith.constant 0 : index
      %33 = vector.load %arg25[%c0_22, %c0_23] : memref<2x64xf32, #tpu.memory_space<vmem>>, vector<2x64xf32>
      tpu.vector_store %arg25[%c0_22, %c0_23], %32 {strides = array<i32>} : memref<2x64xf32, #tpu.memory_space<vmem>>, vector<2x64xf32>,
    } else {
    }
    %c0_i32_3 = arith.constant 0 : i32
    %7 = arith.cmpi eq, %arg2, %c0_i32_3 : i32
    %8 = arith.extui %7 : i1 to i32
    %c0_i32_4 = arith.constant 0 : i32
    %9 = arith.cmpi ne, %8, %c0_i32_4 : i32
    scf.if %9 {
      %cst_14 = arith.constant 0.000000e+00 : f32
      %28 = vector.broadcast %cst_14 : f32 to vector<128x64xf32>
      %c0_15 = arith.constant 0 : index
      %c0_16 = arith.constant 0 : index
      %29 = vector.load %arg24[%c0_15, %c0_16] : memref<128x64xf32, #tpu.memory_space<vmem>>, vector<128x64xf32>
      tpu.vector_store %arg24[%c0_15, %c0_16], %28 {strides = array<i32>} : memref<128x64xf32, #tpu.memory_space<vmem>>, vector<128x64xf32>,
    } else {
    }
    %c128_i32 = arith.constant 128 : i32
    %10 = arith.muli %arg2, %c128_i32 : i32
    %11 = tpu.assume_multiple %10, 128 : i32
    %12 = arith.index_cast %11 : i32 to index
    %c0 = arith.constant 0 : index
    %13 = vector.load %arg22[%12, %c0] : memref<128x64xbf16, #tpu.memory_space<vmem>>, vector<128x64xbf16>
    %14 = arith.index_cast %11 : i32 to index
    %c0_5 = arith.constant 0 : index
    %15 = vector.load %arg23[%14, %c0_5] : memref<128x64xbf16, #tpu.memory_space<vmem>>, vector<128x64xbf16>
    %c1_i32 = arith.constant 1 : i32
    %16 = arith.cmpi eq, %arg0, %c1_i32 : i32
    %17 = arith.select %16, %15, %13 : vector<128x64xbf16>
    %c0_6 = arith.constant 0 : index
    %c0_7 = arith.constant 0 : index
    %18 = vector.load %arg3[%c0_6, %c0_7] : memref<128x128xi8, #tpu.memory_space<vmem>>, vector<128x128xi8>
    %19 = arith.sitofp %18 : vector<128x128xi8> to vector<128x128xf32>
    %20 = arith.truncf %19 : vector<128x128xf32> to vector<128x128xbf16>
    %c0_8 = arith.constant 0 : index
    %c0_9 = arith.constant 0 : index
    %21 = vector.load %arg24[%c0_8, %c0_9] : memref<128x64xf32, #tpu.memory_space<vmem>>, vector<128x64xf32>
    %cst = arith.constant dense<0.000000e+00> : vector<128x64xf32>
    %22 = tpu.matmul %20, %17, %cst {dimension_numbers = #tpu.dot_dimension_numbers<[1], [0], [0], [1], [0, 0, 1, 1], [], []>} : vector<128x128xbf16>, vector<128x64xbf16>, vector<128x64xf32> -> vector<128x64xf32>
    %23 = arith.addf %21, %22 : vector<128x64xf32>
    %c0_10 = arith.constant 0 : index
    %c0_11 = arith.constant 0 : index
    %24 = vector.load %arg24[%c0_10, %c0_11] : memref<128x64xf32, #tpu.memory_space<vmem>>, vector<128x64xf32>
    tpu.vector_store %arg24[%c0_10, %c0_11], %23 {strides = array<i32>} : memref<128x64xf32, #tpu.memory_space<vmem>>, vector<128x64xf32>,
    %c0_i32_12 = arith.constant 0 : i32
    %25 = arith.cmpi eq, %arg2, %c0_i32_12 : i32
    %26 = arith.extui %25 : i1 to i32
    %c0_i32_13 = arith.constant 0 : i32
    %27 = arith.cmpi ne, %26, %c0_i32_13 : i32
    scf.if %27 {
      %c0_14 = arith.constant 0 : index
      %c0_15 = arith.constant 0 : index
      %28 = vector.load %arg4[%c0_14, %c0_15] : memref<128x1xf32, #tpu.memory_space<vmem>>, vector<128x1xf32>
      %c0_16 = arith.constant 0 : index
      %c0_17 = arith.constant 0 : index
      %29 = vector.load %arg24[%c0_16, %c0_17] : memref<128x64xf32, #tpu.memory_space<vmem>>, vector<128x64xf32>
      %30 = vector.broadcast %28 : vector<128x1xf32> to vector<128x64xf32>
      %31 = arith.mulf %29, %30 : vector<128x64xf32>
      %32 = arith.truncf %31 : vector<128x64xf32> to vector<128x64xbf16>
      %c0_i32_18 = arith.constant 0 : i32
      %33 = arith.cmpi eq, %arg0, %c0_i32_18 : i32
      %c0_19 = arith.constant 0 : index
      %c0_20 = arith.constant 0 : index
      %c0_21 = arith.constant 0 : index
      %34 = vector.load %arg6[%c0_19, %c0_20, %c0_21] : memref<3x64x64xbf16, #tpu.memory_space<vmem>>, vector<1x64x64xbf16>
      %35 = vector.shape_cast %34 : vector<1x64x64xbf16> to vector<64x64xbf16>
      %c1_i32_22 = arith.constant 1 : i32
      %36 = arith.cmpi eq, %arg0, %c1_i32_22 : i32
      %c1 = arith.constant 1 : index
      %c0_23 = arith.constant 0 : index
      %c0_24 = arith.constant 0 : index
      %37 = vector.load %arg6[%c1, %c0_23, %c0_24] : memref<3x64x64xbf16, #tpu.memory_space<vmem>>, vector<1x64x64xbf16>
      %38 = vector.shape_cast %37 : vector<1x64x64xbf16> to vector<64x64xbf16>
      %c2 = arith.constant 2 : index
      %c0_25 = arith.constant 0 : index
      %c0_26 = arith.constant 0 : index
      %39 = vector.load %arg6[%c2, %c0_25, %c0_26] : memref<3x64x64xbf16, #tpu.memory_space<vmem>>, vector<1x64x64xbf16>
      %40 = vector.shape_cast %39 : vector<1x64x64xbf16> to vector<64x64xbf16>
      %41 = arith.select %36, %38, %40 : vector<64x64xbf16>
      %42 = arith.select %33, %35, %41 : vector<64x64xbf16>
      %c0_i32_27 = arith.constant 0 : i32
      %43 = arith.cmpi eq, %arg0, %c0_i32_27 : i32
      %c0_28 = arith.constant 0 : index
      %c0_29 = arith.constant 0 : index
      %c0_30 = arith.constant 0 : index
      %44 = vector.load %arg7[%c0_28, %c0_29, %c0_30] : memref<3x1x64xf32, #tpu.memory_space<vmem>>, vector<1x1x64xf32>
      %45 = vector.shape_cast %44 : vector<1x1x64xf32> to vector<1x64xf32>
      %c1_i32_31 = arith.constant 1 : i32
      %46 = arith.cmpi eq, %arg0, %c1_i32_31 : i32
      %c1_32 = arith.constant 1 : index
      %c0_33 = arith.constant 0 : index
      %c0_34 = arith.constant 0 : index
      %47 = vector.load %arg7[%c1_32, %c0_33, %c0_34] : memref<3x1x64xf32, #tpu.memory_space<vmem>>, vector<1x1x64xf32>
      %48 = vector.shape_cast %47 : vector<1x1x64xf32> to vector<1x64xf32>
      %c2_35 = arith.constant 2 : index
      %c0_36 = arith.constant 0 : index
      %c0_37 = arith.constant 0 : index
      %49 = vector.load %arg7[%c2_35, %c0_36, %c0_37] : memref<3x1x64xf32, #tpu.memory_space<vmem>>, vector<1x1x64xf32>
      %50 = vector.shape_cast %49 : vector<1x1x64xf32> to vector<1x64xf32>
      %51 = arith.select %46, %48, %50 : vector<1x64xf32>
      %52 = arith.select %43, %45, %51 : vector<1x64xf32>
      %cst_38 = arith.constant dense<0.000000e+00> : vector<128x64xf32>
      %53 = tpu.matmul %32, %42, %cst_38 {dimension_numbers = #tpu.dot_dimension_numbers<[1], [0], [0], [1], [0, 0, 1, 1], [], []>} : vector<128x64xbf16>, vector<64x64xbf16>, vector<128x64xf32> -> vector<128x64xf32>
      %54 = vector.broadcast %52 : vector<1x64xf32> to vector<128x64xf32>
      %55 = arith.addf %53, %54 : vector<128x64xf32>
      %cst_39 = arith.constant 0.000000e+00 : f32
      %56 = vector.broadcast %cst_39 : f32 to vector<128x64xf32>
      %57 = arith.maximumf %55, %56 : vector<128x64xf32>
      %c128_i32_40 = arith.constant 128 : i32
      %58 = arith.muli %arg1, %c128_i32_40 : i32
      %59 = tpu.assume_multiple %58, 128 : i32
      %60 = vector.broadcast %28 : vector<128x1xf32> to vector<128x64xf32>
      %61 = arith.mulf %57, %60 : vector<128x64xf32>
      %62 = arith.truncf %61 : vector<128x64xf32> to vector<128x64xbf16>
      %c0_i32_41 = arith.constant 0 : i32
      %63 = arith.cmpi eq, %arg0, %c0_i32_41 : i32
      %64 = arith.extui %63 : i1 to i32
      %c0_i32_42 = arith.constant 0 : i32
      %65 = arith.cmpi ne, %64, %c0_i32_42 : i32
      scf.if %65 {
        %77 = arith.index_cast %59 : i32 to index
        %c0_49 = arith.constant 0 : index
        %78 = vector.load %arg23[%77, %c0_49] : memref<128x64xbf16, #tpu.memory_space<vmem>>, vector<128x64xbf16>
        tpu.vector_store %arg23[%77, %c0_49], %62 {strides = array<i32>} : memref<128x64xbf16, #tpu.memory_space<vmem>>, vector<128x64xbf16>,
      } else {
      }
      %c1_i32_43 = arith.constant 1 : i32
      %66 = arith.cmpi eq, %arg0, %c1_i32_43 : i32
      %67 = arith.extui %66 : i1 to i32
      %c0_i32_44 = arith.constant 0 : i32
      %68 = arith.cmpi ne, %67, %c0_i32_44 : i32
      scf.if %68 {
        %77 = arith.index_cast %59 : i32 to index
        %c0_49 = arith.constant 0 : index
        %78 = vector.load %arg22[%77, %c0_49] : memref<128x64xbf16, #tpu.memory_space<vmem>>, vector<128x64xbf16>
        tpu.vector_store %arg22[%77, %c0_49], %62 {strides = array<i32>} : memref<128x64xbf16, #tpu.memory_space<vmem>>, vector<128x64xbf16>,
      } else {
      }
      %c2_i32 = arith.constant 2 : i32
      %69 = arith.cmpi eq, %arg0, %c2_i32 : i32
      %70 = arith.extui %69 : i1 to i32
      %c0_i32_45 = arith.constant 0 : i32
      %71 = arith.cmpi ne, %70, %c0_i32_45 : i32
      scf.if %71 {
        %c0_49 = arith.constant 0 : index
        %c0_50 = arith.constant 0 : index
        %77 = vector.load %arg25[%c0_49, %c0_50] : memref<2x64xf32, #tpu.memory_space<vmem>>, vector<2x64xf32>
        %c0_51 = arith.constant 0 : index
        %c0_52 = arith.constant 0 : index
        %78 = vector.load %arg8[%c0_51, %c0_52] : memref<2x128xbf16, #tpu.memory_space<vmem>>, vector<2x128xbf16>
        %79 = arith.truncf %57 : vector<128x64xf32> to vector<128x64xbf16>
        %cst_53 = arith.constant dense<0.000000e+00> : vector<2x64xf32>
        %80 = tpu.matmul %78, %79, %cst_53 {dimension_numbers = #tpu.dot_dimension_numbers<[1], [0], [0], [1], [0, 0, 1, 1], [], []>} : vector<2x128xbf16>, vector<128x64xbf16>, vector<2x64xf32> -> vector<2x64xf32>
        %81 = arith.addf %77, %80 : vector<2x64xf32>
        %c0_54 = arith.constant 0 : index
        %c0_55 = arith.constant 0 : index
        %82 = vector.load %arg25[%c0_54, %c0_55] : memref<2x64xf32, #tpu.memory_space<vmem>>, vector<2x64xf32>
        tpu.vector_store %arg25[%c0_54, %c0_55], %81 {strides = array<i32>} : memref<2x64xf32, #tpu.memory_space<vmem>>, vector<2x64xf32>,
      } else {
      }
      %c2_i32_46 = arith.constant 2 : i32
      %72 = arith.cmpi eq, %arg0, %c2_i32_46 : i32
      %c0_i32_47 = arith.constant 0 : i32
      %73 = arith.cmpi eq, %arg1, %c0_i32_47 : i32
      %74 = arith.andi %72, %73 : i1
      %75 = arith.extui %74 : i1 to i32
      %c0_i32_48 = arith.constant 0 : i32
      %76 = arith.cmpi ne, %75, %c0_i32_48 : i32
      scf.if %76 {
        %c0_49 = arith.constant 0 : index
        %c0_50 = arith.constant 0 : index
        %77 = vector.load %arg25[%c0_49, %c0_50] : memref<2x64xf32, #tpu.memory_space<vmem>>, vector<2x64xf32>
        %c0_51 = arith.constant 0 : index
        %c0_52 = arith.constant 0 : index
        %78 = vector.load %arg9[%c0_51, %c0_52] : memref<2x8xf32, #tpu.memory_space<vmem>>, vector<2x8xf32>
        %c0_53 = arith.constant 0 : index
        %c0_54 = arith.constant 0 : index
        %79 = vector.load %arg10[%c0_53, %c0_54] : memref<8x64xf32, #tpu.memory_space<vmem>>, vector<8x64xf32>
        %cst_55 = arith.constant dense<0.000000e+00> : vector<2x64xf32>
        %80 = tpu.matmul %78, %79, %cst_55 {dimension_numbers = #tpu.dot_dimension_numbers<[1], [0], [0], [1], [0, 0, 1, 1], [], []>} : vector<2x8xf32>, vector<8x64xf32>, vector<2x64xf32> -> vector<2x64xf32>
        %c0_56 = arith.constant 0 : index
        %c0_57 = arith.constant 0 : index
        %81 = vector.load %arg11[%c0_56, %c0_57] : memref<1x64xf32, #tpu.memory_space<vmem>>, vector<1x64xf32>
        %82 = vector.broadcast %81 : vector<1x64xf32> to vector<2x64xf32>
        %83 = arith.addf %80, %82 : vector<2x64xf32>
        %cst_58 = arith.constant 0.000000e+00 : f32
        %84 = vector.broadcast %cst_58 : f32 to vector<2x64xf32>
        %85 = arith.maximumf %83, %84 : vector<2x64xf32>
        %c0_59 = arith.constant 0 : index
        %c0_60 = arith.constant 0 : index
        %86 = vector.load %arg12[%c0_59, %c0_60] : memref<64x64xf32, #tpu.memory_space<vmem>>, vector<64x64xf32>
        %cst_61 = arith.constant dense<0.000000e+00> : vector<2x64xf32>
        %87 = tpu.matmul %85, %86, %cst_61 {dimension_numbers = #tpu.dot_dimension_numbers<[1], [0], [0], [1], [0, 0, 1, 1], [], []>} : vector<2x64xf32>, vector<64x64xf32>, vector<2x64xf32> -> vector<2x64xf32>
        %c0_62 = arith.constant 0 : index
        %c0_63 = arith.constant 0 : index
        %88 = vector.load %arg13[%c0_62, %c0_63] : memref<1x64xf32, #tpu.memory_space<vmem>>, vector<1x64xf32>
        %89 = vector.broadcast %88 : vector<1x64xf32> to vector<2x64xf32>
        %90 = arith.addf %87, %89 : vector<2x64xf32>
        %cst_64 = arith.constant 0.000000e+00 : f32
        %91 = vector.broadcast %cst_64 : f32 to vector<2x64xf32>
        %92 = arith.maximumf %90, %91 : vector<2x64xf32>
        %c0_65 = arith.constant 0 : index
        %c0_66 = arith.constant 0 : index
        %93 = vector.load %arg14[%c0_65, %c0_66] : memref<64x128xf32, #tpu.memory_space<vmem>>, vector<64x128xf32>
        %cst_67 = arith.constant dense<0.000000e+00> : vector<2x128xf32>
        %94 = tpu.matmul %77, %93, %cst_67 {dimension_numbers = #tpu.dot_dimension_numbers<[1], [0], [0], [1], [0, 0, 1, 1], [], []>} : vector<2x64xf32>, vector<64x128xf32>, vector<2x128xf32> -> vector<2x128xf32>
        %c0_68 = arith.constant 0 : index
        %c0_69 = arith.constant 0 : index
        %95 = vector.load %arg15[%c0_68, %c0_69] : memref<64x128xf32, #tpu.memory_space<vmem>>, vector<64x128xf32>
        %cst_70 = arith.constant dense<0.000000e+00> : vector<2x128xf32>
        %96 = tpu.matmul %92, %95, %cst_70 {dimension_numbers = #tpu.dot_dimension_numbers<[1], [0], [0], [1], [0, 0, 1, 1], [], []>} : vector<2x64xf32>, vector<64x128xf32>, vector<2x128xf32> -> vector<2x128xf32>
        %97 = arith.addf %94, %96 : vector<2x128xf32>
        %c0_71 = arith.constant 0 : index
        %c0_72 = arith.constant 0 : index
        %98 = vector.load %arg16[%c0_71, %c0_72] : memref<1x128xf32, #tpu.memory_space<vmem>>, vector<1x128xf32>
        %99 = vector.broadcast %98 : vector<1x128xf32> to vector<2x128xf32>
        %100 = arith.addf %97, %99 : vector<2x128xf32>
        %cst_73 = arith.constant 0.000000e+00 : f32
        %101 = vector.broadcast %cst_73 : f32 to vector<2x128xf32>
        %102 = arith.maximumf %100, %101 : vector<2x128xf32>
        %c0_74 = arith.constant 0 : index
        %c0_75 = arith.constant 0 : index
        %103 = vector.load %arg17[%c0_74, %c0_75] : memref<128x1xf32, #tpu.memory_space<vmem>>, vector<128x1xf32>
        %cst_76 = arith.constant dense<0.000000e+00> : vector<2x1xf32>
        %104 = tpu.matmul %102, %103, %cst_76 {dimension_numbers = #tpu.dot_dimension_numbers<[1], [0], [0], [1], [0, 0, 1, 1], [], []>} : vector<2x128xf32>, vector<128x1xf32>, vector<2x1xf32> -> vector<2x1xf32>
        %c0_77 = arith.constant 0 : index
        %c0_78 = arith.constant 0 : index
        %105 = vector.load %arg18[%c0_77, %c0_78] : memref<1x1xf32, #tpu.memory_space<vmem>>, vector<1x1xf32>
        %106 = vector.broadcast %105 : vector<1x1xf32> to vector<2x1xf32>
        %107 = arith.addf %104, %106 : vector<2x1xf32>
        %c0_79 = arith.constant 0 : index
        %c0_80 = arith.constant 0 : index
        %108 = vector.load %arg19[%c0_79, %c0_80] : memref<2x1xf32, #tpu.memory_space<vmem>>, vector<2x1xf32>
        tpu.vector_store %arg19[%c0_79, %c0_80], %107 {strides = array<i32>} : memref<2x1xf32, #tpu.memory_space<vmem>>, vector<2x1xf32>,
        %c0_81 = arith.constant 0 : index
        %c0_82 = arith.constant 0 : index
        %109 = vector.load %arg20[%c0_81, %c0_82] : memref<2x64xf32, #tpu.memory_space<vmem>>, vector<2x64xf32>
        tpu.vector_store %arg20[%c0_81, %c0_82], %77 {strides = array<i32>} : memref<2x64xf32, #tpu.memory_space<vmem>>, vector<2x64xf32>,
        %c0_83 = arith.constant 0 : index
        %c0_84 = arith.constant 0 : index
        %110 = vector.load %arg21[%c0_83, %c0_84] : memref<2x128xf32, #tpu.memory_space<vmem>>, vector<2x128xf32>
        tpu.vector_store %arg21[%c0_83, %c0_84], %102 {strides = array<i32>} : memref<2x128xf32, #tpu.memory_space<vmem>>, vector<2x128xf32>,
      } else {
      }
    } else {
    }
    return
  }
  func.func @transform_0(%arg0: i32, %arg1: i32, %arg2: i32) -> (i32, i32) {
    %c0_i32 = arith.constant 0 : i32
    return %arg1, %arg2 : i32, i32
  }
  func.func @transform_1(%arg0: i32, %arg1: i32, %arg2: i32) -> (i32, i32) {
    %c0_i32 = arith.constant 0 : i32
    %c0_i32_0 = arith.constant 0 : i32
    return %arg1, %c0_i32 : i32, i32
  }
  func.func @transform_2(%arg0: i32, %arg1: i32, %arg2: i32) -> (i32, i32) {
    %c0_i32 = arith.constant 0 : i32
    %c0_i32_0 = arith.constant 0 : i32
    %c0_i32_1 = arith.constant 0 : i32
    return %c0_i32, %c0_i32_0 : i32, i32
  }
  func.func @transform_3(%arg0: i32, %arg1: i32, %arg2: i32) -> (i32, i32, i32) {
    %c0_i32 = arith.constant 0 : i32
    %c0_i32_0 = arith.constant 0 : i32
    %c0_i32_1 = arith.constant 0 : i32
    %c0_i32_2 = arith.constant 0 : i32
    return %c0_i32, %c0_i32_0, %c0_i32_1 : i32, i32, i32
  }
  func.func @transform_4(%arg0: i32, %arg1: i32, %arg2: i32) -> (i32, i32, i32) {
    %c0_i32 = arith.constant 0 : i32
    %c0_i32_0 = arith.constant 0 : i32
    %c0_i32_1 = arith.constant 0 : i32
    %c0_i32_2 = arith.constant 0 : i32
    return %c0_i32, %c0_i32_0, %c0_i32_1 : i32, i32, i32
  }
  func.func @transform_5(%arg0: i32, %arg1: i32, %arg2: i32) -> (i32, i32) {
    %c0_i32 = arith.constant 0 : i32
    %c0_i32_0 = arith.constant 0 : i32
    return %c0_i32, %arg1 : i32, i32
  }
  func.func @transform_6(%arg0: i32, %arg1: i32, %arg2: i32) -> (i32, i32) {
    %c0_i32 = arith.constant 0 : i32
    %c0_i32_0 = arith.constant 0 : i32
    %c0_i32_1 = arith.constant 0 : i32
    return %c0_i32, %c0_i32_0 : i32, i32
  }
  func.func @transform_7(%arg0: i32, %arg1: i32, %arg2: i32) -> (i32, i32) {
    %c0_i32 = arith.constant 0 : i32
    %c0_i32_0 = arith.constant 0 : i32
    %c0_i32_1 = arith.constant 0 : i32
    return %c0_i32, %c0_i32_0 : i32, i32
  }
  func.func @transform_8(%arg0: i32, %arg1: i32, %arg2: i32) -> (i32, i32) {
    %c0_i32 = arith.constant 0 : i32
    %c0_i32_0 = arith.constant 0 : i32
    %c0_i32_1 = arith.constant 0 : i32
    return %c0_i32, %c0_i32_0 : i32, i32
  }
  func.func @transform_9(%arg0: i32, %arg1: i32, %arg2: i32) -> (i32, i32) {
    %c0_i32 = arith.constant 0 : i32
    %c0_i32_0 = arith.constant 0 : i32
    %c0_i32_1 = arith.constant 0 : i32
    return %c0_i32, %c0_i32_0 : i32, i32
  }
  func.func @transform_10(%arg0: i32, %arg1: i32, %arg2: i32) -> (i32, i32) {
    %c0_i32 = arith.constant 0 : i32
    %c0_i32_0 = arith.constant 0 : i32
    %c0_i32_1 = arith.constant 0 : i32
    return %c0_i32, %c0_i32_0 : i32, i32
  }
  func.func @transform_11(%arg0: i32, %arg1: i32, %arg2: i32) -> (i32, i32) {
    %c0_i32 = arith.constant 0 : i32
    %c0_i32_0 = arith.constant 0 : i32
    %c0_i32_1 = arith.constant 0 : i32
    return %c0_i32, %c0_i32_0 : i32, i32
  }
  func.func @transform_12(%arg0: i32, %arg1: i32, %arg2: i32) -> (i32, i32) {
    %c0_i32 = arith.constant 0 : i32
    %c0_i32_0 = arith.constant 0 : i32
    %c0_i32_1 = arith.constant 0 : i32
    return %c0_i32, %c0_i32_0 : i32, i32
  }
  func.func @transform_13(%arg0: i32, %arg1: i32, %arg2: i32) -> (i32, i32) {
    %c0_i32 = arith.constant 0 : i32
    %c0_i32_0 = arith.constant 0 : i32
    %c0_i32_1 = arith.constant 0 : i32
    return %c0_i32, %c0_i32_0 : i32, i32
  }
  func.func @transform_14(%arg0: i32, %arg1: i32, %arg2: i32) -> (i32, i32) {
    %c0_i32 = arith.constant 0 : i32
    %c0_i32_0 = arith.constant 0 : i32
    %c0_i32_1 = arith.constant 0 : i32
    return %c0_i32, %c0_i32_0 : i32, i32
  }
  func.func @transform_15(%arg0: i32, %arg1: i32, %arg2: i32) -> (i32, i32) {
    %c0_i32 = arith.constant 0 : i32
    %c0_i32_0 = arith.constant 0 : i32
    %c0_i32_1 = arith.constant 0 : i32
    return %c0_i32, %c0_i32_0 : i32, i32
  }
  func.func @transform_16(%arg0: i32, %arg1: i32, %arg2: i32) -> (i32, i32) {
    %c0_i32 = arith.constant 0 : i32
    %c0_i32_0 = arith.constant 0 : i32
    %c0_i32_1 = arith.constant 0 : i32
    return %c0_i32, %c0_i32_0 : i32, i32
  }
  func.func @transform_17(%arg0: i32, %arg1: i32, %arg2: i32) -> (i32, i32) {
    %c0_i32 = arith.constant 0 : i32
    %c0_i32_0 = arith.constant 0 : i32
    %c0_i32_1 = arith.constant 0 : i32
    return %c0_i32, %c0_i32_0 : i32, i32
  }
  func.func @transform_18(%arg0: i32, %arg1: i32, %arg2: i32) -> (i32, i32) {
    %c0_i32 = arith.constant 0 : i32
    %c0_i32_0 = arith.constant 0 : i32
    %c0_i32_1 = arith.constant 0 : i32
    return %c0_i32, %c0_i32_0 : i32, i32
  }
}

</mosaic_0001>

<bundles_post_ra>
// kernel: tpu_custom_call.1
= control target key start
LH: loop header
LB: loop body
LE: loop exit
PB: predicated region body
PF: predicated region fallthrough
CT: control target
= control target key end

     0   :  { %s3681_s0 = inlined_call_operand.vmem [shape: s8[128,128], index: 0, kind: input, shape index: {}]   ;;  %s3682_s1 = inlined_call_operand.vmem [shape: f32[128,1], index: 1, kind: input, shape index: {}]   ;;  %s3683_s2 = inlined_call_operand.vmem [shape: bf16[128,64], index: 2, kind: input, shape index: {}]   ;;  %s3684_s3 = inlined_call_operand.vmem [shape: bf16[3,64,64], index: 3, kind: input, shape index: {}]   ;;  %s3685_s4 = inlined_call_operand.vmem [shape: f32[3,1,64], index: 4, kind: input, shape index: {}]   ;;  %s3686_s5 = inlined_call_operand.vmem [shape: bf16[2,128], index: 5, kind: input, shape index: {}]   ;;  %s3687_s6 = inlined_call_operand.vmem [shape: f32[2,8], index: 6, kind: input, shape index: {}]   ;;  %s3688_s7 = inlined_call_operand.vmem [shape: f32[8,64], index: 7, kind: input, shape index: {}]   ;;  %s3689_s8 = inlined_call_operand.vmem [shape: f32[1,64], index: 8, kind: input, shape index: {}]   ;;  %s3690_s9 = inlined_call_operand.vmem [shape: f32[64,64], index: 9, kind: input, shape index: {}]   ;;  %s3691_s10 = inlined_call_operand.vmem [shape: f32[1,64], index: 10, kind: input, shape index: {}]   ;;  %s3692_s11 = inlined_call_operand.vmem [shape: f32[64,128], index: 11, kind: input, shape index: {}]   ;;  %s3693_s12 = inlined_call_operand.vmem [shape: f32[64,128], index: 12, kind: input, shape index: {}]   ;;  %s3694_s13 = inlined_call_operand.vmem [shape: f32[1,128], index: 13, kind: input, shape index: {}]   ;;  %s3695_s14 = inlined_call_operand.vmem [shape: f32[128,1], index: 14, kind: input, shape index: {}]   ;;  %s3696_s15 = inlined_call_operand.<no memory space> [shape: f32[1,1], index: 15, kind: input, shape index: {}]   ;;  %s3697_s16 = inlined_call_operand.vmem [shape: f32[2,1], index: 16, kind: output, shape index: {0}]   ;;  %s3698_s17 = inlined_call_operand.hbm [shape: f32[2,64], index: 17, kind: output, shape index: {1}]   ;;  %s3699_s18 = inlined_call_operand.hbm [shape: f32[2,128], index: 18, kind: output, shape index: {2}]  }
   0x1   :  { %3705 = sst [smem:[#allocation13_spill]] %s3681_s0  ;;  %v24_v0 = vstv %s3696_s15 }
   0x2   :  { %3706 = sst [smem:[#allocation14_spill]] %s3682_s1  ;;  %25 = vst [vmem:[#allocation6] sm:$0x1] %v24_v0 }
   0x3   :  { %3707 = sst [smem:[#allocation15_spill]] %s3683_s2 }
   0x4   :  { %26 = vsyncpa [#allocation8], 0 }
   0x5   :  { %27 = vsyncpa [#allocation10], 0  ;;  %s2771_s29 = smov 0   ;;  %s2773_s30 = smov 0  }
   0x6   :  { %s2775_s0 = smov 0  }
   0x7 LB: > { %s52_s19 = sadd.s32 1, %s2657_s30  ;;  %p2153_p1 = scmp.ge.s32.totalorder %s2661_s0, 1  ;;  %s2661_s0 = sphi %s2775_s0, %s33_s0   ;;  %s2657_s30 = sphi %s2773_s30, %s3718_s30   ;;  %s2653_s29 = sphi %s2771_s29, %s3717_s29  }
   0x8   : > { %p54_p0 = scmp.ge.s32.totalorder %s52_s19, 3  ;;  %p550_p2 = scmp.lt.s32.totalorder %s2661_s0, 4 }
   0xa   : > { %s3720_s19 = smov (%p54_p0, %s52_s19), 0  ;;  %p551_p3 = pnand %p2153_p1, %p550_p2 }
   0xb   : > { %p629_p4 = scmp.eq.s32.totalorder (!%p551_p3), %s2653_s29, 0 }
   0xc   : > { %554 = sbr.rel (%p551_p3) target bundleno = 1606 (0x646), region = 84 }
  0x11   : > { %637 = sbr.rel (!%p629_p4) target bundleno = 37 (0x25), region = 88  ;;  %s3708_s21 = sld [smem:[#allocation15_spill]] (%p629_p4)  ;;  %vm654_vm0 = vcmask (%p629_p4), 519168   ;;  %v2663_v6 = vmov (%p629_p4), 0   ;;  %vm687_vm1 = vcmask (%p629_p4), 517120   ;;  %v2664_v18 = vmov (%p629_p4), 0.0  }
  0x12   : > { %671 = vst.msk [vmem:[#allocation3] sm:$0xf] (%p629_p4), %vm654_vm0, %v2663_v6  ;;  %672 = vst.msk [vmem:[#allocation3 + $0x4] sm:$0xf] (%p629_p4), %vm654_vm0, %v2663_v6 }
  0x13   : > { %673 = vst.msk [vmem:[#allocation3 + $0x8] sm:$0xf] (%p629_p4), %vm654_vm0, %v2663_v6  ;;  %674 = vst.msk [vmem:[#allocation3 + $0xc] sm:$0xf] (%p629_p4), %vm654_vm0, %v2663_v6 }
  0x14   : > { %675 = vst.msk [vmem:[#allocation3 + $0x10] sm:$0xf] (%p629_p4), %vm654_vm0, %v2663_v6  ;;  %676 = vst.msk [vmem:[#allocation3 + $0x14] sm:$0xf] (%p629_p4), %vm654_vm0, %v2663_v6 }
  0x15   : > { %677 = vst.msk [vmem:[#allocation3 + $0x18] sm:$0xf] (%p629_p4), %vm654_vm0, %v2663_v6  ;;  %678 = vst.msk [vmem:[#allocation3 + $0x1c] sm:$0xf] (%p629_p4), %vm654_vm0, %v2663_v6 }
  0x16   : > { %679 = vst.msk [vmem:[#allocation3 + $0x20] sm:$0xf] %vm654_vm0, %v2663_v6  ;;  %680 = vst.msk [vmem:[#allocation3 + $0x24] sm:$0xf] %vm654_vm0, %v2663_v6 }
  0x17   : > { %v638_v1 = vld [vmem:[%s3708_s21] sm:$0xf]  ;;  %v639_v2 = vld [vmem:[%s3708_s21 + $0x4] sm:$0xf]  ;;  %v640_v3 = vld [vmem:[%s3708_s21 + $0x8] sm:$0xf] }
  0x18   : > { %655 = vst.msk [vmem:[#allocation2] sm:$0xf] %vm654_vm0, %v638_v1  ;;  %656 = vst.msk [vmem:[#allocation2 + $0x4] sm:$0xf] %vm654_vm0, %v639_v2  ;;  %v641_v4 = vld [vmem:[%s3708_s21 + $0xc] sm:$0xf] }
  0x19   : > { %v642_v5 = vld [vmem:[%s3708_s21 + $0x10] sm:$0xf]  ;;  %681 = vst.msk [vmem:[#allocation3 + $0x28] sm:$0xf] %vm654_vm0, %v2663_v6  ;;  %682 = vst.msk [vmem:[#allocation3 + $0x2c] sm:$0xf] %vm654_vm0, %v2663_v6 }
  0x1a   : > { %683 = vst.msk [vmem:[#allocation3 + $0x30] sm:$0xf] %vm654_vm0, %v2663_v6  ;;  %684 = vst.msk [vmem:[#allocation3 + $0x34] sm:$0xf] %vm654_vm0, %v2663_v6  ;;  %v643_v7 = vld [vmem:[%s3708_s21 + $0x14] sm:$0xf] }
  0x1b   : > { %685 = vst.msk [vmem:[#allocation3 + $0x38] sm:$0xf] %vm654_vm0, %v2663_v6  ;;  %686 = vst.msk [vmem:[#allocation3 + $0x3c] sm:$0xf] %vm654_vm0, %v2663_v6  ;;  %v644_v8 = vld [vmem:[%s3708_s21 + $0x18] sm:$0xf] }
  0x1c   : > { %657 = vst.msk [vmem:[#allocation2 + $0x8] sm:$0xf] %vm654_vm0, %v640_v3  ;;  %658 = vst.msk [vmem:[#allocation2 + $0xc] sm:$0xf] %vm654_vm0, %v641_v4  ;;  %v645_v9 = vld [vmem:[%s3708_s21 + $0x1c] sm:$0xf] }
  0x1d   : > { %659 = vst.msk [vmem:[#allocation2 + $0x10] sm:$0xf] %vm654_vm0, %v642_v5  ;;  %660 = vst.msk [vmem:[#allocation2 + $0x14] sm:$0xf] %vm654_vm0, %v643_v7  ;;  %v646_v10 = vld [vmem:[%s3708_s21 + $0x20] sm:$0xf] }
  0x1e   : > { %661 = vst.msk [vmem:[#allocation2 + $0x18] sm:$0xf] %vm654_vm0, %v644_v8  ;;  %662 = vst.msk [vmem:[#allocation2 + $0x1c] sm:$0xf] %vm654_vm0, %v645_v9  ;;  %v647_v11 = vld [vmem:[%s3708_s21 + $0x24] sm:$0xf] }
  0x1f   : > { %v648_v12 = vld [vmem:[%s3708_s21 + $0x28] sm:$0xf]  ;;  %663 = vst.msk [vmem:[#allocation2 + $0x20] sm:$0xf] %vm654_vm0, %v646_v10  ;;  %664 = vst.msk [vmem:[#allocation2 + $0x24] sm:$0xf] %vm654_vm0, %v647_v11 }
  0x20   : > { %665 = vst.msk [vmem:[#allocation2 + $0x28] sm:$0xf] %vm654_vm0, %v648_v12  ;;  %v649_v13 = vld [vmem:[%s3708_s21 + $0x2c] sm:$0xf]  ;;  %v650_v14 = vld [vmem:[%s3708_s21 + $0x30] sm:$0xf] }
  0x21   : > { %v651_v15 = vld [vmem:[%s3708_s21 + $0x34] sm:$0xf]  ;;  %666 = vst.msk [vmem:[#allocation2 + $0x2c] sm:$0xf] %vm654_vm0, %v649_v13  ;;  %667 = vst.msk [vmem:[#allocation2 + $0x30] sm:$0xf] %vm654_vm0, %v650_v14 }
  0x22   : > { %668 = vst.msk [vmem:[#allocation2 + $0x34] sm:$0xf] %vm654_vm0, %v651_v15  ;;  %v652_v16 = vld [vmem:[%s3708_s21 + $0x38] sm:$0xf]  ;;  %v653_v17 = vld [vmem:[%s3708_s21 + $0x3c] sm:$0xf] }
  0x23   : > { %669 = vst.msk [vmem:[#allocation2 + $0x38] sm:$0xf] %vm654_vm0, %v652_v16  ;;  %670 = vst.msk [vmem:[#allocation2 + $0x3c] sm:$0xf] %vm654_vm0, %v653_v17 }
  0x24   : > { %688 = vst.msk [vmem:[#allocation5] sm:$0x3] %vm687_vm1, %v2664_v18 }
  0x25 PF: > { %p748_p5 = scmp.eq.s32.totalorder %s2653_s29, 1  ;;  %s3709_s23 = sld [smem:[#allocation13_spill]]  ;;  %v746_v22 = vld [vmem:[#allocation3 + $0x38] sm:$0xf]  ;;  %v747_v24 = vld [vmem:[#allocation3 + $0x3c] sm:$0xf] }
  0x26   : > { %v744_v27 = vld [vmem:[#allocation3 + $0x30] sm:$0xf]  ;;  %v745_v28 = vld [vmem:[#allocation3 + $0x34] sm:$0xf]  ;;  %v742_v33 = vld [vmem:[#allocation3 + $0x28] sm:$0xf] }
  0x27   : > { %s749_s24 = scalar_select %p748_p5, 1, 0  ;;  %v724_v30 = vld [vmem:[#allocation2 + $0x28] sm:$0xf]  ;;  %v743_v34 = vld [vmem:[#allocation3 + $0x2c] sm:$0xf] }
  0x28   : > { %v726_v25 = vld [vmem:[#allocation2 + $0x30] sm:$0xf]  ;;  %v725_v31 = vld [vmem:[#allocation2 + $0x2c] sm:$0xf]  ;;  %v722_v43 = vld [vmem:[#allocation2 + $0x20] sm:$0xf] }
  0x29   : > { %v727_v26 = vld [vmem:[#allocation2 + $0x34] sm:$0xf]  ;;  %v750_v29 = vstv %s749_s24  ;;  %v723_v44 = vld [vmem:[#allocation2 + $0x24] sm:$0xf]  ;;  %v720_v50 = vld [vmem:[#allocation2 + $0x18] sm:$0xf] }
  0x2a   : > { %v728_v20 = vld [vmem:[#allocation2 + $0x38] sm:$0xf]  ;;  %v729_v21 = vld [vmem:[#allocation2 + $0x3c] sm:$0xf]  ;;  %vm2882_vm2 = vcmp.eq.s32.totalorder %v750_v29, 1  ;;  %s3712_s27 = sld [smem:[#allocation14_spill]] }
  0x2b   : > { %v2879_v19 = vld [vmem:[%s3709_s23] sm:$0xff]  ;;  %v766_v35 = vsel %vm2882_vm2, %v746_v22, %v728_v20  ;;  %v767_v36 = vsel %vm2882_vm2, %v747_v24, %v729_v21  ;;  %v764_v37 = vsel %vm2882_vm2, %v744_v27, %v726_v25  ;;  %v765_v38 = vsel %vm2882_vm2, %v745_v28, %v727_v26  ;;  %v721_v51 = vld [vmem:[#allocation2 + $0x1c] sm:$0xf]  ;;  %v738_v52 = vld [vmem:[#allocation3 + $0x18] sm:$0xf]  ;;  %p2194_p6 = scmp.ne.s32.totalorder %s2653_s29, 0 }
  0x2c   : > { %v772_v23 = vunpack.c.l.s8.bf16 %v2879_v19  ;;  %v2163_v39 = vcombine.low %v766_v35, %v767_v36  ;;  %v2162_v40 = vcombine.low %v764_v37, %v765_v38  ;;  %v762_v41 = vsel %vm2882_vm2, %v742_v33, %v724_v30  ;;  %v740_v45 = vld [vmem:[#allocation3 + $0x20] sm:$0xf]  ;;  %v741_v46 = vld [vmem:[#allocation3 + $0x24] sm:$0xf]  ;;  %v739_v53 = vld [vmem:[#allocation3 + $0x1c] sm:$0xf] }
  0x2d   : > { %v763_v42 = vsel %vm2882_vm2, %v743_v34, %v725_v31  ;;  %v760_v48 = vsel %vm2882_vm2, %v740_v45, %v722_v43  ;;  %v761_v49 = vsel %vm2882_vm2, %v741_v46, %v723_v44  ;;  %v2665_v56 = vmov 0   ;;  %v718_v60 = vld [vmem:[#allocation2 + $0x10] sm:$0xf]  ;;  %v719_v61 = vld [vmem:[#allocation2 + $0x14] sm:$0xf]  ;;  %v769_v30 = vld [vmem:[%s3709_s23 + $0x8] sm:$0xff] }
  0x2e   : > { %2378 = vmatprep.mubr.bf16.mxu0 %v772_v23  ;;  %2362 = vmatprep.subr.bf16.mxu0 %v2163_v39  ;;  %v2161_v47 = vcombine.low %v762_v41, %v763_v42  ;;  %v2160_v57 = vcombine.low %v760_v48, %v761_v49  ;;  %v758_v58 = vsel %vm2882_vm2, %v738_v52, %v720_v50  ;;  %v736_v62 = vld [vmem:[#allocation3 + $0x10] sm:$0xf]  ;;  %v737_v63 = vld [vmem:[#allocation3 + $0x14] sm:$0xf]  ;;  %v716_v5 = vld [vmem:[#allocation2 + $0x8] sm:$0xf]  ;;  %v773_v31 = vunpack.c.h.s8.bf16 %v2879_v19 }
  0x2f   : > { %2363 = vmatpush3.bf16.msra.mxu0 %v2163_v39  ;;  %2581 = vset.pattern.permute.xlu0 %v2665_v56  ;;  %v759_v59 = vsel %vm2882_vm2, %v739_v53, %v721_v51  ;;  %v756_v3 = vsel %vm2882_vm2, %v736_v62, %v718_v60  ;;  %v757_v4 = vsel %vm2882_vm2, %v737_v63, %v719_v61  ;;  %v717_v6 = vld [vmem:[#allocation2 + $0xc] sm:$0xf]  ;;  %v734_v7 = vld [vmem:[#allocation3 + $0x8] sm:$0xf]  ;;  %v714_v14 = vld [vmem:[#allocation2] sm:$0xf]  ;;  %v774_v35 = vunpack.c.l.s8.bf16 %v769_v30 }
  0x30   : > { %2364 = vmatprep.subr.bf16.mxu0 %v2162_v40  ;;  %v977_v54 = vld [vmem:[%s3712_s27] sm:$0xff]  ;;  %v979_v55 = vld [vmem:[%s3712_s27 + $0x10] sm:$0xff]  ;;  %2582 = vset.pattern.permute.xlu1 %v2665_v56  ;;  %v978_v0 = vld [vmem:[%s3712_s27 + $0x8] sm:$0xff]  ;;  %v2159_v2 = vcombine.low %v758_v58, %v759_v59  ;;  %v2158_v11 = vcombine.low %v756_v3, %v757_v4  ;;  %v754_v12 = vsel %vm2882_vm2, %v734_v7, %v716_v5  ;;  %vm692_vm3 = vcmask 523264   ;;  %s1147_s2 = scalar_select %p629_p4, 1, 0 }
  0x31   : > { %1011 = vperm.xlu0 %2581, %v977_v54   ;;  %1021 = vperm.xlu1 %2582, %v979_v55   ;;  %v980_v1 = vld [vmem:[%s3712_s27 + $0x18] sm:$0xff]  ;;  %v735_v8 = vld [vmem:[#allocation3 + $0xc] sm:$0xf]  ;;  %v981_v9 = vld [vmem:[%s3712_s27 + $0x20] sm:$0xff]  ;;  %v2666_v24 = vmov 0.0   ;;  %v775_v38 = vunpack.c.h.s8.bf16 %v769_v30 }
  0x32   : > { %v982_v10 = vld [vmem:[%s3712_s27 + $0x28] sm:$0xff]  ;;  %v755_v13 = vsel %vm2882_vm2, %v735_v8, %v717_v6  ;;  %v715_v15 = vld [vmem:[#allocation2 + $0x4] sm:$0xf]  ;;  %v732_v16 = vld [vmem:[#allocation3] sm:$0xf]  ;;  %695 = vst.msk [vmem:[#allocation4 + $0x10] sm:$0xff] %vm692_vm3, %v2666_v24 }
  0x33   : > { %2365 = vmatpush3.bf16.msra.mxu0 %v2162_v40  ;;  %v733_v17 = vld [vmem:[#allocation3 + $0x4] sm:$0xf]  ;;  %v983_v18 = vld [vmem:[%s3712_s27 + $0x30] sm:$0xff]  ;;  %v984_v20 = vld [vmem:[%s3712_s27 + $0x38] sm:$0xff]  ;;  %v2157_v21 = vcombine.low %v754_v12, %v755_v13  ;;  %v752_v22 = vsel %vm2882_vm2, %v732_v16, %v714_v14  ;;  %693 = vst.msk [vmem:[#allocation4] sm:$0xff] %vm692_vm3, %v2666_v24 }
  0x34   : > { %2366 = vmatprep.subr.bf16.mxu0 %v2161_v47  ;;  %v753_v23 = vsel %vm2882_vm2, %v733_v17, %v715_v15  ;;  %694 = vst.msk [vmem:[#allocation4 + $0x8] sm:$0xff] %vm692_vm3, %v2666_v24  ;;  %696 = vst.msk [vmem:[#allocation4 + $0x18] sm:$0xff] %vm692_vm3, %v2666_v24  ;;  %v985_v25 = vld [vmem:[%s3712_s27 + $0x40] sm:$0xff]  ;;  %v986_v26 = vld [vmem:[%s3712_s27 + $0x48] sm:$0xff] }
  0x35   : > { %1016 = vperm.xlu0 %2581, %v978_v0   ;;  %1026 = vperm.xlu1 %2582, %v980_v1   ;;  %697 = vst.msk [vmem:[#allocation4 + $0x20] sm:$0xff] %vm692_vm3, %v2666_v24  ;;  %698 = vst.msk [vmem:[#allocation4 + $0x28] sm:$0xff] %vm692_vm3, %v2666_v24  ;;  %v2156_v27 = vcombine.low %v752_v22, %v753_v23  ;;  %v987_v28 = vld [vmem:[%s3712_s27 + $0x50] sm:$0xff]  ;;  %v988_v29 = vld [vmem:[%s3712_s27 + $0x58] sm:$0xff] }
  0x36   : > { %699 = vst.msk [vmem:[#allocation4 + $0x30] sm:$0xff] %vm692_vm3, %v2666_v24  ;;  %700 = vst.msk [vmem:[#allocation4 + $0x38] sm:$0xff] %vm692_vm3, %v2666_v24  ;;  %v989_v33 = vld [vmem:[%s3712_s27 + $0x60] sm:$0xff]  ;;  %v990_v34 = vld [vmem:[%s3712_s27 + $0x68] sm:$0xff] }
  0x37   : > { %2367 = vmatpush3.bf16.msra.mxu0 %v2161_v47  ;;  %701 = vst.msk [vmem:[#allocation4 + $0x40] sm:$0xff] %vm692_vm3, %v2666_v24  ;;  %702 = vst.msk [vmem:[#allocation4 + $0x48] sm:$0xff] %vm692_vm3, %v2666_v24  ;;  %v991_v36 = vld [vmem:[%s3712_s27 + $0x70] sm:$0xff]  ;;  %v992_v19 = vld [vmem:[%s3712_s27 + $0x78] sm:$0xff]  ;;  %v1148_v47 = vstv %s1147_s2 }
  0x38   : > { %2368 = vmatprep.subr.bf16.mxu0 %v2160_v57  ;;  %703 = vst.msk [vmem:[#allocation4 + $0x50] sm:$0xff] %vm692_vm3, %v2666_v24  ;;  %704 = vst.msk [vmem:[#allocation4 + $0x58] sm:$0xff] %vm692_vm3, %v2666_v24  ;;  %v770_v37 = vld [vmem:[%s3709_s23 + $0x10] sm:$0xff]  ;;  %v771_v40 = vld [vmem:[%s3709_s23 + $0x18] sm:$0xff]  ;;  %vm3011_vm4 = vcmp.eq.s32.totalorder %v1148_v47, 1 }
  0x39   : > { %1031 = vperm.xlu0 %2581, %v981_v9   ;;  %1036 = vperm.xlu1 %2582, %v982_v10   ;;  %705 = vst.msk [vmem:[#allocation4 + $0x60] sm:$0xff] %vm692_vm3, %v2666_v24  ;;  %706 = vst.msk [vmem:[#allocation4 + $0x68] sm:$0xff] %vm692_vm3, %v2666_v24  ;;  %v776_v39 = vunpack.c.l.s8.bf16 %v770_v37  ;;  %v777_v41 = vunpack.c.h.s8.bf16 %v770_v37  ;;  %v778_v42 = vunpack.c.l.s8.bf16 %v771_v40  ;;  %v779_v43 = vunpack.c.h.s8.bf16 %v771_v40  ;;  %v2170_v44 = vld [vmem:[%s3684_s3 + $0x38] sm:$0xf]  ;;  %v2171_v45 = vld [vmem:[%s3684_s3 + $0x3c] sm:$0xf] }
  0x3a   : > { %707 = vst.msk [vmem:[#allocation4 + $0x70] sm:$0xff] %vm692_vm3, %v2666_v24  ;;  %708 = vst.msk [vmem:[#allocation4 + $0x78] sm:$0xff] %vm692_vm3, %v2666_v24  ;;  %v2178_v46 = vld [vmem:[%s3684_s3 + $0x58] sm:$0xf]  ;;  %v1120_v49 = vld [vmem:[%s3684_s3 + $0x1c] sm:$0xf] }
  0x3b   : > { %2369 = vmatpush3.bf16.msra.mxu0 %v2160_v57  ;;  %v1119_v48 = vld [vmem:[%s3684_s3 + $0x18] sm:$0xf]  ;;  %v1145_v50 = vsel %vm2882_vm2, %v2170_v44, %v2178_v46  ;;  %v2179_v52 = vld [vmem:[%s3684_s3 + $0x5c] sm:$0xf]  ;;  %v2168_v56 = vld [vmem:[%s3684_s3 + $0x30] sm:$0xf] }
  0x3c   : > { %2370 = vmatprep.subr.bf16.mxu0 %v2159_v2  ;;  %v1156_v53 = vsel %vm3011_vm4, %v1119_v48, %v1145_v50  ;;  %v1146_v54 = vsel %vm2882_vm2, %v2171_v45, %v2179_v52  ;;  %v2169_v57 = vld [vmem:[%s3684_s3 + $0x34] sm:$0xf]  ;;  %v2176_v58 = vld [vmem:[%s3684_s3 + $0x50] sm:$0xf]  ;;  %v1115_v4 = vld [vmem:[%s3684_s3 + $0x8] sm:$0xf] }
  0x3d   : > { %1041 = vperm.xlu0 %2581, %v983_v18   ;;  %1046 = vperm.xlu1 %2582, %v984_v20   ;;  %v1157_v55 = vsel %vm3011_vm4, %v1120_v49, %v1146_v54  ;;  %v1117_v60 = vld [vmem:[%s3684_s3 + $0x10] sm:$0xf]  ;;  %v1118_v61 = vld [vmem:[%s3684_s3 + $0x14] sm:$0xf]  ;;  %v1143_v62 = vsel %vm2882_vm2, %v2168_v56, %v2176_v58  ;;  %v1116_v5 = vld [vmem:[%s3684_s3 + $0xc] sm:$0xf] }
  0x3e   : > { %v2185_v59 = vcombine.low %v1156_v53, %v1157_v55  ;;  %v2177_v63 = vld [vmem:[%s3684_s3 + $0x54] sm:$0xf]  ;;  %v1154_v0 = vsel %vm3011_vm4, %v1117_v60, %v1143_v62  ;;  %v2166_v6 = vld [vmem:[%s3684_s3 + $0x28] sm:$0xf]  ;;  %v2167_v7 = vld [vmem:[%s3684_s3 + $0x2c] sm:$0xf] }
  0x3f   : > { %2371 = vmatpush3.bf16.msra.mxu0 %v2159_v2  ;;  %v1144_v1 = vsel %vm2882_vm2, %v2169_v57, %v2177_v63  ;;  %v2174_v8 = vld [vmem:[%s3684_s3 + $0x48] sm:$0xf]  ;;  %v2175_v9 = vld [vmem:[%s3684_s3 + $0x4c] sm:$0xf]  ;;  %v2164_v12 = vld [vmem:[%s3684_s3 + $0x20] sm:$0xf] }
  0x40   : > { %2372 = vmatprep.subr.bf16.mxu0 %v2158_v11  ;;  %2394 = vmatprep.subr.bf16.mxu1 %v2185_v59  ;;  %v1155_v2 = vsel %vm3011_vm4, %v1118_v61, %v1144_v1  ;;  %v1141_v10 = vsel %vm2882_vm2, %v2166_v6, %v2174_v8  ;;  %v2165_v13 = vld [vmem:[%s3684_s3 + $0x24] sm:$0xf]  ;;  %v1113_v16 = vld [vmem:[%s3684_s3] sm:$0xf]  ;;  %v787_v49 = vld [vmem:[#allocation4 + $0x38] sm:$0xff] }
  0x41   : > { %1051 = vperm.xlu0 %2581, %v985_v25   ;;  %1056 = vperm.xlu1 %2582, %v986_v26   ;;  %v2184_v3 = vcombine.low %v1154_v0, %v1155_v2  ;;  %v1152_v14 = vsel %vm3011_vm4, %v1115_v4, %v1141_v10  ;;  %v1114_v17 = vld [vmem:[%s3684_s3 + $0x4] sm:$0xf]  ;;  %v2172_v20 = vld [vmem:[%s3684_s3 + $0x40] sm:$0xf]  ;;  %v785_v54 = vld [vmem:[#allocation4 + $0x28] sm:$0xff] }
  0x42   : > { %2395 = vmatpush3.bf16.msra.mxu1 %v2185_v59  ;;  %v1139_v22 = vsel %vm2882_vm2, %v2164_v12, %v2172_v20  ;;  %v784_v45 = vld [vmem:[#allocation4 + $0x20] sm:$0xff]  ;;  %v790_v57 = vld [vmem:[#allocation4 + $0x50] sm:$0xff]  ;;  %v791_v8 = vld [vmem:[#allocation4 + $0x58] sm:$0xff] }
  0x43   : > { %2373 = vmatpush3.bf16.msra.mxu0 %v2158_v11  ;;  %2396 = vmatprep.subr.bf16.mxu1 %v2184_v3  ;;  %v1142_v11 = vsel %vm2882_vm2, %v2167_v7, %v2175_v9  ;;  %v1150_v24 = vsel %vm3011_vm4, %v1113_v16, %v1139_v22  ;;  %v788_v0 = vld [vmem:[#allocation4 + $0x40] sm:$0xff] }
  0x44   : > { %2374 = vmatprep.subr.bf16.mxu0 %v2157_v21  ;;  %v1153_v15 = vsel %vm3011_vm4, %v1116_v5, %v1142_v11 }
  0x45   : > { %1061 = vperm.xlu0 %2581, %v987_v28   ;;  %1066 = vperm.xlu1 %2582, %v988_v29   ;;  %v2183_v18 = vcombine.low %v1152_v14, %v1153_v15  ;;  %v782_v28 = vld [vmem:[#allocation4 + $0x10] sm:$0xff] }
  0x46   : > { %2397 = vmatpush3.bf16.msra.mxu1 %v2184_v3 }
  0x47   : > { %2375 = vmatpush3.bf16.msra.mxu0 %v2157_v21  ;;  %v2173_v21 = vld [vmem:[%s3684_s3 + $0x44] sm:$0xf]  ;;  %2398 = vmatprep.subr.bf16.mxu1 %v2183_v18 }
  0x48   : > { %2376 = vmatprep.subr.bf16.mxu0 %v2156_v27  ;;  %v1140_v23 = vsel %vm2882_vm2, %v2165_v13, %v2173_v21  ;;  %v789_v13 = vld [vmem:[#allocation4 + $0x48] sm:$0xff] }
  0x49   : > { %1071 = vperm.xlu0 %2581, %v989_v33   ;;  %1076 = vperm.xlu1 %2582, %v990_v34   ;;  %v1151_v25 = vsel %vm3011_vm4, %v1114_v17, %v1140_v23 }
  0x4a   : > { %2399 = vmatpush3.bf16.msra.mxu1 %v2183_v18  ;;  %v2182_v26 = vcombine.low %v1150_v24, %v1151_v25  ;;  %v794_v18 = vld [vmem:[#allocation4 + $0x70] sm:$0xff] }
  0x4b   : > { %2377 = vmatpush3.bf16.msra.mxu0 %v2156_v27 }
  0x4c   : > { %2400 = vmatprep.subr.bf16.mxu1 %v2182_v26 }
  0x4d   : > { %1081 = vperm.xlu0 %2581, %v991_v36   ;;  %1086 = vperm.xlu1 %2582, %v992_v19  }
  0x4e   : > { %2379 = vmatmul.mubr.bf16.vlgmr.msra.gmra.mxu0 %v773_v31  ;;  %2401 = vmatpush3.bf16.msra.mxu1 %v2182_v26  ;;  %v780_v31 = vld [vmem:[#allocation4] sm:$0xff] }
  0x4f   : > { %2382 = vmatprep.mubr.bf16.mxu0 %v774_v35  ;;  %v783_v35 = vld [vmem:[#allocation4 + $0x18] sm:$0xff]  ;;  %v792_v26 = vld [vmem:[#allocation4 + $0x60] sm:$0xff] }
  0x56   : > { %2383 = vmatmul.mubr.bf16.gmra.mxu0 %v775_v38  ;;  %v781_v38 = vld [vmem:[#allocation4 + $0x8] sm:$0xff] }
  0x57   : > { %2386 = vmatprep.mubr.bf16.mxu0 %v776_v39 }
  0x5e   : > { %2387 = vmatmul.mubr.bf16.gmra.mxu0 %v777_v41 }
  0x5f   : > { %2390 = vmatprep.mubr.bf16.mxu0 %v778_v42  ;;  %v786_v42 = vld [vmem:[#allocation4 + $0x30] sm:$0xff] }
  0x66   : > { %2391 = vmatmul.mubr.bf16.gmra.mxu0 %v779_v43 }
  0xac   : > { %v3102_v27 = vpop.permute.xlu1 %1021  ;;  %v3104_v29 = vpop.permute.xlu0 %1011 }
  0xb0   : > { %v3106_v36 = vpop.permute.xlu1 %1026  ;;  %v3109_v39 = vpop.permute.xlu0 %1016 }
  0xb4   : > { %v3113_v46 = vpop.permute.xlu1 %1036  ;;  %v3116_v50 = vpop.permute.xlu0 %1031 }
  0xb8   : > { %v3120_v60 = vpop.permute.xlu1 %1046  ;;  %v3124_v3 = vpop.permute.xlu0 %1041 }
  0xbc   : > { %v3131_v15 = vpop.permute.xlu1 %1056  ;;  %v3136_v22 = vpop.permute.xlu0 %1051 }
 0x10e   : > { %v2380_v30 = vpop.f32.mrf.mxu0 }
 0x10f   : > { %v943_v33 = vadd.f32 %v2380_v30, %v782_v28 }
 0x110   : > { %v878_v34 = vpop.f32.mrf.mxu0 }
 0x111   : > { %960 = vst.msk [vmem:[#allocation4 + $0x10] sm:$0xff] %vm692_vm3, %v943_v33  ;;  %v941_v19 = vadd.f32 %v878_v34, %v780_v31 }
 0x112   : > { %v2381_v37 = vpop.f32.mrf.mxu0 }
 0x113   : > { %958 = vst.msk [vmem:[#allocation4] sm:$0xff] %vm692_vm3, %v941_v19  ;;  %v944_v40 = vadd.f32 %v2381_v37, %v783_v35  ;;  %v795_v19 = vld [vmem:[#allocation4 + $0x78] sm:$0xff] }
 0x114   : > { %v881_v41 = vpop.f32.mrf.mxu0 }
 0x115   : > { %961 = vst.msk [vmem:[#allocation4 + $0x18] sm:$0xff] %vm692_vm3, %v944_v40  ;;  %v942_v43 = vadd.f32 %v881_v41, %v781_v38  ;;  %v3144_v38 = vpop.permute.xlu1 %1066 }
 0x116   : > { %v2384_v44 = vpop.f32.mrf.mxu0 }
 0x117   : > { %959 = vst.msk [vmem:[#allocation4 + $0x8] sm:$0xff] %vm692_vm3, %v942_v43  ;;  %v947_v47 = vadd.f32 %v2384_v44, %v786_v42  ;;  %v793_v43 = vld [vmem:[#allocation4 + $0x68] sm:$0xff] }
 0x118   : > { %v894_v48 = vpop.f32.mrf.mxu0  ;;  %v995_v62 = vld [vmem:[#allocation4 + $0x10] sm:$0xff] }
 0x119   : > { %964 = vst.msk [vmem:[#allocation4 + $0x30] sm:$0xff] %vm692_vm3, %v947_v47  ;;  %v945_v52 = vadd.f32 %v894_v48, %v784_v45  ;;  %v1091_v9 = vmul.f32 %v3102_v27, %v995_v62  ;;  %v3147_v45 = vpop.permute.xlu0 %1061 }
 0x11a   : > { %v2385_v53 = vpop.f32.mrf.mxu0  ;;  %v993_v58 = vld [vmem:[#allocation4] sm:$0xff] }
 0x11b   : > { %962 = vst.msk [vmem:[#allocation4 + $0x20] sm:$0xff] %vm692_vm3, %v945_v52  ;;  %v948_v55 = vadd.f32 %v2385_v53, %v787_v49  ;;  %v1089_v5 = vmul.f32 %v3104_v29, %v993_v58 }
 0x11c   : > { %v897_v56 = vpop.f32.mrf.mxu0  ;;  %v996_v59 = vld [vmem:[#allocation4 + $0x18] sm:$0xff] }
 0x11d   : > { %965 = vst.msk [vmem:[#allocation4 + $0x38] sm:$0xff] %vm692_vm3, %v948_v55  ;;  %v946_v61 = vadd.f32 %v897_v56, %v785_v54  ;;  %v1092_v2 = vmul.f32 %v3106_v36, %v996_v59  ;;  %v3160_v62 = vpop.permute.xlu0 %1071 }
 0x11e   : > { %v2388_v63 = vpop.f32.mrf.mxu0  ;;  %v994_v1 = vld [vmem:[#allocation4 + $0x8] sm:$0xff] }
 0x11f   : > { %963 = vst.msk [vmem:[#allocation4 + $0x28] sm:$0xff] %vm692_vm3, %v946_v61  ;;  %v951_v4 = vadd.f32 %v2388_v63, %v790_v57  ;;  %v1090_v6 = vmul.f32 %v3109_v39, %v994_v1  ;;  %v1106_v14 = vpack.c.bf16 %v1092_v2, %v1091_v9  ;;  %v3154_v57 = vpop.permute.xlu1 %1076 }
 0x120   : > { %v910_v7 = vpop.f32.mrf.mxu0  ;;  %v999_v24 = vld [vmem:[#allocation4 + $0x30] sm:$0xff] }
 0x121   : > { %968 = vst.msk [vmem:[#allocation4 + $0x50] sm:$0xff] %vm692_vm3, %v951_v4  ;;  %v949_v10 = vadd.f32 %v910_v7, %v788_v0  ;;  %v1105_v11 = vpack.c.bf16 %v1090_v6, %v1089_v5  ;;  %v1095_v37 = vmul.f32 %v3124_v3, %v999_v24 }
 0x122   : > { %v2389_v12 = vpop.f32.mrf.mxu0  ;;  %v997_v20 = vld [vmem:[#allocation4 + $0x20] sm:$0xff] }
 0x123   : > { %966 = vst.msk [vmem:[#allocation4 + $0x40] sm:$0xff] %vm692_vm3, %v949_v10  ;;  %v952_v16 = vadd.f32 %v2389_v12, %v791_v8  ;;  %2402 = vmatprep.mubr.msk.bf16.mxu1 %vm692_vm3, %v1105_v11  ;;  %v1093_v33 = vmul.f32 %v3116_v50, %v997_v20  ;;  %v3164_v4 = vpop.permute.xlu1 %1086  ;;  %v3167_v8 = vpop.permute.xlu0 %1081  ;;  %v1158_v20 = vld [vmem:[%s3685_s4] sm:$0x1] }
 0x124   : > { %v913_v17 = vpop.f32.mrf.mxu0  ;;  %2403 = vmatmul.mubr.msk.bf16.vlgmr.msra.gmra.mxu1 %vm692_vm3, %v1106_v14  ;;  %v1000_v21 = vld [vmem:[#allocation4 + $0x38] sm:$0xff]  ;;  %v1166_v14 = vlaneseq }
 0x125   : > { %969 = vst.msk [vmem:[#allocation4 + $0x58] sm:$0xff] %vm692_vm3, %v952_v16  ;;  %v950_v23 = vadd.f32 %v913_v17, %v789_v13  ;;  %v1096_v30 = vmul.f32 %v3120_v60, %v1000_v21  ;;  %v2180_v16 = vld [vmem:[%s3685_s4 + $0x1] sm:$0x1]  ;;  %v2181_v17 = vld [vmem:[%s3685_s4 + $0x2] sm:$0x1] }
 0x126   : > { %v2392_v25 = vpop.f32.mrf.mxu0  ;;  %v998_v28 = vld [vmem:[#allocation4 + $0x28] sm:$0xff]  ;;  %v1163_v21 = vsel %vm2882_vm2, %v2180_v16, %v2181_v17 }
 0x127   : > { %967 = vst.msk [vmem:[#allocation4 + $0x48] sm:$0xff] %vm692_vm3, %v950_v23  ;;  %v955_v31 = vadd.f32 %v2392_v25, %v794_v18  ;;  %v1094_v34 = vmul.f32 %v3113_v46, %v998_v28  ;;  %v1108_v44 = vpack.c.bf16 %v1096_v30, %v1095_v37  ;;  %v1167_v18 = vshrl.u32 %v1166_v14, 7 }
 0x128   : > { %v926_v35 = vpop.f32.mrf.mxu0  ;;  %v1003_v54 = vld [vmem:[#allocation4 + $0x50] sm:$0xff]  ;;  %v1164_v24 = vsel %vm3011_vm4, %v1158_v20, %v1163_v21 }
 0x129   : > { %972 = vst.msk [vmem:[#allocation4 + $0x70] sm:$0xff] %vm692_vm3, %v955_v31  ;;  %v953_v40 = vadd.f32 %v926_v35, %v792_v26  ;;  %v1107_v41 = vpack.c.bf16 %v1094_v34, %v1093_v33  ;;  %v1099_v61 = vmul.f32 %v3147_v45, %v1003_v54  ;;  %v1168_v23 = vsub.s32 0, %v1167_v18 }
 0x12a   : > { %v2393_v42 = vpop.f32.mrf.mxu0  ;;  %v1001_v49 = vld [vmem:[#allocation4 + $0x40] sm:$0xff] }
 0x12b   : > { %970 = vst.msk [vmem:[#allocation4 + $0x60] sm:$0xff] %vm692_vm3, %v953_v40  ;;  %v956_v47 = vadd.f32 %v2393_v42, %v795_v19  ;;  %2406 = vmatprep.mubr.msk.bf16.mxu1 %vm692_vm3, %v1107_v41  ;;  %v1097_v58 = vmul.f32 %v3136_v22, %v1001_v49  ;;  %v1169_v25 = vrot.slane %v1164_v24, %v1168_v23 }
 0x12c   : > { %v929_v48 = vpop.f32.mrf.mxu0  ;;  %2407 = vmatmul.mubr.msk.bf16.gmra.mxu1 %vm692_vm3, %v1108_v44  ;;  %v1004_v52 = vld [vmem:[#allocation4 + $0x58] sm:$0xff] }
 0x12d   : > { %973 = vst.msk [vmem:[#allocation4 + $0x78] sm:$0xff] %vm692_vm3, %v956_v47  ;;  %v954_v53 = vadd.f32 %v929_v48, %v793_v43  ;;  %v1100_v56 = vmul.f32 %v3144_v38, %v1004_v52 }
 0x12e   : > { %v1002_v55 = vld [vmem:[#allocation4 + $0x48] sm:$0xff] }
 0x12f   : > { %971 = vst.msk [vmem:[#allocation4 + $0x68] sm:$0xff] %vm692_vm3, %v954_v53  ;;  %v1098_v59 = vmul.f32 %v3131_v15, %v1002_v55  ;;  %v1110_v0 = vpack.c.bf16 %v1100_v56, %v1099_v61 }
 0x130   : > { %v1007_v5 = vld [vmem:[#allocation4 + $0x70] sm:$0xff] }
 0x131   : > { %v1109_v63 = vpack.c.bf16 %v1098_v59, %v1097_v58  ;;  %v1103_v11 = vmul.f32 %v3167_v8, %v1007_v5 }
 0x132   : > { %v1005_v1 = vld [vmem:[#allocation4 + $0x60] sm:$0xff] }
 0x133   : > { %2410 = vmatprep.mubr.msk.bf16.mxu1 %vm692_vm3, %v1109_v63  ;;  %v1101_v9 = vmul.f32 %v3160_v62, %v1005_v1 }
 0x134   : > { %2411 = vmatmul.mubr.msk.bf16.gmra.mxu1 %vm692_vm3, %v1110_v0  ;;  %v1008_v2 = vld [vmem:[#allocation4 + $0x78] sm:$0xff] }
 0x135   : > { %v1104_v7 = vmul.f32 %v3164_v4, %v1008_v2 }
 0x136   : > { %v1006_v6 = vld [vmem:[#allocation4 + $0x68] sm:$0xff] }
 0x137   : > { %v1102_v10 = vmul.f32 %v3154_v57, %v1006_v6  ;;  %v1112_v13 = vpack.c.bf16 %v1104_v7, %v1103_v11 }
 0x139   : > { %v1111_v12 = vpack.c.bf16 %v1102_v10, %v1101_v9 }
 0x13b   : > { %2414 = vmatprep.mubr.msk.bf16.mxu1 %vm692_vm3, %v1111_v12 }
 0x13c   : > { %2415 = vmatmul.mubr.msk.bf16.gmra.mxu1 %vm692_vm3, %v1112_v13 }
 0x1e4   : > { %v2404_v26 = vpop.f32.mrf.mxu1 }
 0x1e5   : > { %v3187_v28 = vadd.f32 %v2404_v26, %v1169_v25 }
 0x1e6   : > { %v1253_v30 = vpop.f32.mrf.mxu1 }
 0x1e7   : > { %v1318_v31 = vmax.f32 %v3187_v28, 0.0  ;;  %v3190_v33 = vadd.f32 %v1253_v30, %v1169_v25 }
 0x1e8   : > { %v2405_v34 = vpop.f32.mrf.mxu1 }
 0x1e9   : > { %v3195_v35 = vmul.f32 %v1318_v31, %v3102_v27  ;;  %v1316_v32 = vmax.f32 %v3190_v33, 0.0  ;;  %v3198_v19 = vadd.f32 %v2405_v34, %v1169_v25 }
 0x1ea   : > { %v1256_v51 = vpop.f32.mrf.mxu1 }
 0x1eb   : > { %v3203_v37 = vmul.f32 %v1316_v32, %v3104_v29  ;;  %v1319_v40 = vmax.f32 %v3198_v19, 0.0  ;;  %v3206_v41 = vadd.f32 %v1256_v51, %v1169_v25 }
 0x1ec   : > { %v2408_v42 = vpop.f32.mrf.mxu1 }
 0x1ed   : > { %v3211_v27 = vmul.f32 %v1319_v40, %v3106_v36  ;;  %v1317_v43 = vmax.f32 %v3206_v41, 0.0  ;;  %v3214_v44 = vadd.f32 %v2408_v42, %v1169_v25 }
 0x1ee   : > { %v1269_v47 = vpop.f32.mrf.mxu1 }
 0x1ef   : > { %v3219_v29 = vmul.f32 %v1317_v43, %v3109_v39  ;;  %v1322_v48 = vmax.f32 %v3214_v44, 0.0  ;;  %v3222_v49 = vadd.f32 %v1269_v47, %v1169_v25 }
 0x1f0   : > { %v2409_v52 = vpop.f32.mrf.mxu1 }
 0x1f1   : > { %v3227_v36 = vmul.f32 %v1322_v48, %v3124_v3  ;;  %v1320_v53 = vmax.f32 %v3222_v49, 0.0  ;;  %v3230_v54 = vadd.f32 %v2409_v52, %v1169_v25 }
 0x1f2   : > { %v1272_v55 = vpop.f32.mrf.mxu1 }
 0x1f3   : > { %v3235_v39 = vmul.f32 %v1320_v53, %v3116_v50  ;;  %v1323_v56 = vmax.f32 %v3230_v54, 0.0  ;;  %v3238_v58 = vadd.f32 %v1272_v55, %v1169_v25 }
 0x1f4   : > { %v2412_v59 = vpop.f32.mrf.mxu1 }
 0x1f5   : > { %v3243_v3 = vmul.f32 %v1323_v56, %v3120_v60  ;;  %v1321_v61 = vmax.f32 %v3238_v58, 0.0  ;;  %v3246_v63 = vadd.f32 %v2412_v59, %v1169_v25 }
 0x1f6   : > { %v1285_v0 = vpop.f32.mrf.mxu1 }
 0x1f7   : > { %v3251_v50 = vmul.f32 %v1321_v61, %v3113_v46  ;;  %v1326_v1 = vmax.f32 %v3246_v63, 0.0  ;;  %v3254_v2 = vadd.f32 %v1285_v0, %v1169_v25 }
 0x1f8   : > { %v2413_v5 = vpop.f32.mrf.mxu1 }
 0x1f9   : > { %v3259_v60 = vmul.f32 %v1326_v1, %v3147_v45  ;;  %v1324_v6 = vmax.f32 %v3254_v2, 0.0  ;;  %v3262_v7 = vadd.f32 %v2413_v5, %v1169_v25 }
 0x1fa   : > { %v1288_v9 = vpop.f32.mrf.mxu1 }
 0x1fb   : > { %v3267_v46 = vmul.f32 %v1324_v6, %v3136_v22  ;;  %v1327_v10 = vmax.f32 %v3262_v7, 0.0  ;;  %v3270_v11 = vadd.f32 %v1288_v9, %v1169_v25 }
 0x1fc   : > { %v2416_v12 = vpop.f32.mrf.mxu1 }
 0x1fd   : > { %v3275_v45 = vmul.f32 %v1327_v10, %v3144_v38  ;;  %v1325_v13 = vmax.f32 %v3270_v11, 0.0  ;;  %v3278_v14 = vadd.f32 %v2416_v12, %v1169_v25 }
 0x1fe   : > { %v1301_v16 = vpop.f32.mrf.mxu1 }
 0x1ff   : > { %v3283_v22 = vmul.f32 %v1325_v13, %v3131_v15  ;;  %v1330_v17 = vmax.f32 %v3278_v14, 0.0  ;;  %v3286_v18 = vadd.f32 %v1301_v16, %v1169_v25 }
 0x200   : > { %v2417_v20 = vpop.f32.mrf.mxu1 }
 0x201   : > { %v3291_v38 = vmul.f32 %v1330_v17, %v3167_v8  ;;  %v1328_v21 = vmax.f32 %v3286_v18, 0.0  ;;  %v3294_v23 = vadd.f32 %v2417_v20, %v1169_v25 }
 0x202   : > { %v1304_v24 = vpop.f32.mrf.mxu1 }
 0x203   : > { %v3299_v15 = vmul.f32 %v1328_v21, %v3160_v62  ;;  %v1331_v26 = vmax.f32 %v3294_v23, 0.0  ;;  %v3302_v30 = vadd.f32 %v1304_v24, %v1169_v25  ;;  %1359 = sbr.rel (%p2194_p6) target bundleno = 530 (0x212), region = 100 }
 0x205   : > { %v3307_v34 = vmul.f32 %v1331_v26, %v3164_v4  ;;  %v1329_v8 = vmax.f32 %v3302_v30, 0.0 }
 0x207   : > { %v3313_v51 = vmul.f32 %v1329_v8, %v3154_v57 }
 0x208   : > { %v2246_v62 = vpack.c.bf16 %v3203_v37, %v3203_v37  ;;  %vm1420_vm5 = vcmask 519168   ;;  %v2247_v25 = vpack.c.bf16 %v3219_v29, %v3219_v29  ;;  %v2248_v4 = vpack.c.bf16 %v3195_v35, %v3195_v35 }
 0x209   : > { %v2249_v42 = vpack.c.bf16 %v3211_v27, %v3211_v27  ;;  %v2250_v57 = vpack.c.bf16 %v3235_v39, %v3235_v39  ;;  %v2251_v47 = vpack.c.bf16 %v3251_v50, %v3251_v50  ;;  %v2252_v52 = vpack.c.bf16 %v3227_v36, %v3227_v36 }
 0x20a   : > { %1421 = vst.msk [vmem:[#allocation3] sm:$0xf] %vm1420_vm5, %v2246_v62  ;;  %1422 = vst.msk [vmem:[#allocation3 + $0x4] sm:$0xf] %vm1420_vm5, %v2247_v25  ;;  %v2253_v55 = vpack.c.bf16 %v3243_v3, %v3243_v3  ;;  %v2254_v59 = vpack.c.bf16 %v3267_v46, %v3267_v46  ;;  %v2255_v0 = vpack.c.bf16 %v3283_v22, %v3283_v22 }
 0x20b   : > { %1423 = vst.msk [vmem:[#allocation3 + $0x8] sm:$0xf] %vm1420_vm5, %v2248_v4  ;;  %v2256_v5 = vpack.c.bf16 %v3259_v60, %v3259_v60  ;;  %1424 = vst.msk [vmem:[#allocation3 + $0xc] sm:$0xf] %vm1420_vm5, %v2249_v42  ;;  %v2257_v9 = vpack.c.bf16 %v3275_v45, %v3275_v45  ;;  %v2258_v12 = vpack.c.bf16 %v3299_v15, %v3299_v15 }
 0x20c   : > { %1425 = vst.msk [vmem:[#allocation3 + $0x10] sm:$0xf] %vm1420_vm5, %v2250_v57  ;;  %1426 = vst.msk [vmem:[#allocation3 + $0x14] sm:$0xf] %vm1420_vm5, %v2251_v47  ;;  %v2259_v16 = vpack.c.bf16 %v3313_v51, %v3313_v51  ;;  %v2260_v20 = vpack.c.bf16 %v3291_v38, %v3291_v38  ;;  %v2261_v24 = vpack.c.bf16 %v3307_v34, %v3307_v34 }
 0x20d   : > { %1427 = vst.msk [vmem:[#allocation3 + $0x18] sm:$0xf] %vm1420_vm5, %v2252_v52  ;;  %1428 = vst.msk [vmem:[#allocation3 + $0x1c] sm:$0xf] %vm1420_vm5, %v2253_v55 }
 0x20e   : > { %1429 = vst.msk [vmem:[#allocation3 + $0x20] sm:$0xf] %vm1420_vm5, %v2254_v59  ;;  %1430 = vst.msk [vmem:[#allocation3 + $0x24] sm:$0xf] %vm1420_vm5, %v2255_v0 }
 0x20f   : > { %1431 = vst.msk [vmem:[#allocation3 + $0x28] sm:$0xf] %vm1420_vm5, %v2256_v5  ;;  %1432 = vst.msk [vmem:[#allocation3 + $0x2c] sm:$0xf] %vm1420_vm5, %v2257_v9 }
 0x210   : > { %1433 = vst.msk [vmem:[#allocation3 + $0x30] sm:$0xf] %vm1420_vm5, %v2258_v12  ;;  %1434 = vst.msk [vmem:[#allocation3 + $0x34] sm:$0xf] %vm1420_vm5, %v2259_v16 }
 0x211   : > { %1435 = vst.msk [vmem:[#allocation3 + $0x38] sm:$0xf] %vm1420_vm5, %v2260_v20  ;;  %1436 = vst.msk [vmem:[#allocation3 + $0x3c] sm:$0xf] %vm1420_vm5, %v2261_v24 }
 0x212 PF: > { %p2211_p7 = scmp.ne.s32.totalorder %s2653_s29, 1 }
 0x214   : > { %1439 = sbr.rel (%p2211_p7) target bundleno = 547 (0x223), region = 104 }
 0x219   : > { %v2262_v62 = vpack.c.bf16 %v3203_v37, %v3203_v37  ;;  %vm1500_vm6 = vcmask 519168   ;;  %v2263_v25 = vpack.c.bf16 %v3219_v29, %v3219_v29  ;;  %v2264_v4 = vpack.c.bf16 %v3195_v35, %v3195_v35 }
 0x21a   : > { %v2265_v42 = vpack.c.bf16 %v3211_v27, %v3211_v27  ;;  %v2266_v57 = vpack.c.bf16 %v3235_v39, %v3235_v39  ;;  %v2267_v47 = vpack.c.bf16 %v3251_v50, %v3251_v50  ;;  %v2268_v52 = vpack.c.bf16 %v3227_v36, %v3227_v36 }
 0x21b   : > { %1501 = vst.msk [vmem:[#allocation2] sm:$0xf] %vm1500_vm6, %v2262_v62  ;;  %1502 = vst.msk [vmem:[#allocation2 + $0x4] sm:$0xf] %vm1500_vm6, %v2263_v25  ;;  %v2269_v35 = vpack.c.bf16 %v3243_v3, %v3243_v3  ;;  %v2270_v37 = vpack.c.bf16 %v3267_v46, %v3267_v46  ;;  %v2271_v27 = vpack.c.bf16 %v3283_v22, %v3283_v22 }
 0x21c   : > { %1503 = vst.msk [vmem:[#allocation2 + $0x8] sm:$0xf] %vm1500_vm6, %v2264_v4  ;;  %v2272_v29 = vpack.c.bf16 %v3259_v60, %v3259_v60  ;;  %1504 = vst.msk [vmem:[#allocation2 + $0xc] sm:$0xf] %vm1500_vm6, %v2265_v42  ;;  %v2273_v36 = vpack.c.bf16 %v3275_v45, %v3275_v45  ;;  %v2274_v39 = vpack.c.bf16 %v3299_v15, %v3299_v15 }
 0x21d   : > { %1505 = vst.msk [vmem:[#allocation2 + $0x10] sm:$0xf] %vm1500_vm6, %v2266_v57  ;;  %1506 = vst.msk [vmem:[#allocation2 + $0x14] sm:$0xf] %vm1500_vm6, %v2267_v47  ;;  %v2275_v3 = vpack.c.bf16 %v3313_v51, %v3313_v51  ;;  %v2276_v50 = vpack.c.bf16 %v3291_v38, %v3291_v38  ;;  %v2277_v60 = vpack.c.bf16 %v3307_v34, %v3307_v34 }
 0x21e   : > { %1507 = vst.msk [vmem:[#allocation2 + $0x18] sm:$0xf] %vm1500_vm6, %v2268_v52  ;;  %1508 = vst.msk [vmem:[#allocation2 + $0x1c] sm:$0xf] %vm1500_vm6, %v2269_v35 }
 0x21f   : > { %1509 = vst.msk [vmem:[#allocation2 + $0x20] sm:$0xf] %vm1500_vm6, %v2270_v37  ;;  %1510 = vst.msk [vmem:[#allocation2 + $0x24] sm:$0xf] %vm1500_vm6, %v2271_v27 }
 0x220   : > { %1511 = vst.msk [vmem:[#allocation2 + $0x28] sm:$0xf] %vm1500_vm6, %v2272_v29  ;;  %1512 = vst.msk [vmem:[#allocation2 + $0x2c] sm:$0xf] %vm1500_vm6, %v2273_v36 }
 0x221   : > { %1513 = vst.msk [vmem:[#allocation2 + $0x30] sm:$0xf] %vm1500_vm6, %v2274_v39  ;;  %1514 = vst.msk [vmem:[#allocation2 + $0x34] sm:$0xf] %vm1500_vm6, %v2275_v3 }
 0x222   : > { %1515 = vst.msk [vmem:[#allocation2 + $0x38] sm:$0xf] %vm1500_vm6, %v2276_v50  ;;  %1516 = vst.msk [vmem:[#allocation2 + $0x3c] sm:$0xf] %vm1500_vm6, %v2277_v60 }
 0x223 PF: > { %p1517_p8 = scmp.eq.s32.totalorder %s2653_s29, 2  ;;  %p2228_p9 = scmp.ne.s32.totalorder %s2653_s29, 2 }
 0x225   : > { %1520 = sbr.rel (%p2228_p9) target bundleno = 786 (0x312), region = 108 }
 0x22a   : > { %v1530_v46 = vpack.c.bf16 %v1331_v26, %v1330_v17  ;;  %v2667_v45 = vmov 0.0   ;;  %v1529_v22 = vpack.c.bf16 %v1329_v8, %v1328_v21  ;;  %vm2668_vm7 = vmmov 0   ;;  %v1521_v49 = vld [vmem:[#allocation5] sm:$0x3] }
 0x22b   : > { %2418 = vmatprep.subr.bf16.mxu0 %v2667_v45  ;;  %2434 = vmatprep.mubr.msk.bf16.mxu0 %vm2668_vm7, %v2667_v45  ;;  %v1528_v14 = vpack.c.bf16 %v1327_v10, %v1326_v1  ;;  %v1527_v17 = vpack.c.bf16 %v1325_v13, %v1324_v6  ;;  %v1526_v18 = vpack.c.bf16 %v1323_v56, %v1322_v48  ;;  %v1522_v48 = vld [vmem:[%s3686_s5] sm:$0x1]  ;;  %vm1572_vm8 = vcmask 517120  }
 0x22c   : > { %2419 = vmatpush3.bf16.msra.mxu0 %v1530_v46  ;;  %v1525_v63 = vpack.c.bf16 %v1321_v61, %v1320_v53  ;;  %v1524_v1 = vpack.c.bf16 %v1319_v40, %v1318_v31  ;;  %v1523_v44 = vpack.c.bf16 %v1317_v43, %v1316_v32 }
 0x22d   : > { %2420 = vmatprep.subr.bf16.mxu0 %v2667_v45 }
 0x230   : > { %2421 = vmatpush3.bf16.msra.mxu0 %v1529_v22 }
 0x231   : > { %2422 = vmatprep.subr.bf16.mxu0 %v2667_v45 }
 0x234   : > { %2423 = vmatpush3.bf16.msra.mxu0 %v1528_v14 }
 0x235   : > { %2424 = vmatprep.subr.bf16.mxu0 %v2667_v45 }
 0x238   : > { %2425 = vmatpush3.bf16.msra.mxu0 %v1527_v17 }
 0x239   : > { %2426 = vmatprep.subr.bf16.mxu0 %v2667_v45 }
 0x23c   : > { %2427 = vmatpush3.bf16.msra.mxu0 %v1526_v18 }
 0x23d   : > { %2428 = vmatprep.subr.bf16.mxu0 %v2667_v45 }
 0x240   : > { %2429 = vmatpush3.bf16.msra.mxu0 %v1525_v63 }
 0x241   : > { %2430 = vmatprep.subr.bf16.mxu0 %v2667_v45 }
 0x244   : > { %2431 = vmatpush3.bf16.msra.mxu0 %v1524_v1 }
 0x245   : > { %2432 = vmatprep.subr.bf16.mxu0 %v2667_v45 }
 0x248   : > { %2433 = vmatpush3.bf16.msra.mxu0 %v1523_v44 }
 0x24b   : > { %2435 = vmatmul.mubr.bf16.vlgmr.msra.gmra.mxu0 %v1522_v48 }
 0x30b   : > { %v1565_v53 = vpop.f32.mrf.mxu0 }
 0x30c   : > { %v1571_v28 = vadd.f32 %v1565_v53, %v1521_v49 }
 0x30d   : > { %v2436_v19 = vpop.f32.mrf.mxu0 }
 0x30e   : > { %1573 = vst.msk [vmem:[#allocation5] sm:$0x3] %vm1572_vm8, %v1571_v28 }
 0x30f   : > { %v1568_v31 = vpop.f32.mrf.mxu0 }
 0x311   : > { %v2437_v40 = vpop.f32.mrf.mxu0 }
 0x312 PF: > { %1577 = sbr.rel (!%p1517_p8) target bundleno = 1578 (0x62a), region = 112  ;;  %v1580_v33 = vld [vmem:[%s3688_s7] sm:$0xff] (%p1517_p8)  ;;  %vm1588_vm9 = vcmask (%p1517_p8), 64512   ;;  %v2669_v41 = vmov (%p1517_p8), 0.0   ;;  %vm2670_vm10 = vmmov (%p1517_p8), 0   ;;  %v1670_v43 = vld [vmem:[%s3690_s9 + $0x38] sm:$0xff] (%p1517_p8) }
 0x313   : > { %v1579_v32 = vld [vmem:[%s3687_s6] sm:$0x3] (%p1517_p8)  ;;  %2438 = vmatprep.subr.mxu1 (%p1517_p8), %v2669_v41  ;;  %2440 = vmatprep.mubr.msk.f32.mxu1 (%p1517_p8), %vm2670_vm10, %v2669_v41  ;;  %v1669_v54 = vld [vmem:[%s3690_s9 + $0x30] sm:$0xff] (%p1517_p8)  ;;  %v1668_v56 = vld [vmem:[%s3690_s9 + $0x28] sm:$0xff] (%p1517_p8)  ;;  %vm2018_vm11 = vcmask (%p1517_p8), 517120   ;;  %vm2016_vm12 = vcmask (%p1517_p8), 1024  }
 0x314   : > { %2439 = vmatpush3.msra.mxu1 (%p1517_p8), %v1580_v33  ;;  %2462 = vmatprep.subr.mxu0 (%p1517_p8), %v2669_v41  ;;  %v1667_v58 = vld [vmem:[%s3690_s9 + $0x20] sm:$0xff] (%p1517_p8)  ;;  %v1666_v61 = vld [vmem:[%s3690_s9 + $0x18] sm:$0xff] (%p1517_p8)  ;;  %v1665_v2 = vld [vmem:[%s3690_s9 + $0x10] sm:$0xff] (%p1517_p8) }
 0x315   : > { %2441 = vmatmul.mubr.msk.f32.vlgmr.msra.gmra.mxu1 (%p1517_p8), %vm1588_vm9, %v1579_v32  ;;  %2443 = vmatprep.subr.mxu1 (%p1517_p8), %v2669_v41  ;;  %v1664_v6 = vld [vmem:[%s3690_s9 + $0x8] sm:$0xff] (%p1517_p8)  ;;  %v1663_v7 = vld [vmem:[%s3690_s9] sm:$0xff] (%p1517_p8)  ;;  %v1767_v10 = vld [vmem:[%s3693_s12 + $0x38] sm:$0xff] (%p1517_p8) }
 0x316   : > { %2444 = vmatpush3.msra.mxu1 (%p1517_p8), %v1670_v43  ;;  %2459 = vmatprep.mubr.msk.f32.mxu1 (%p1517_p8), %vm2670_vm10, %v2669_v41  ;;  %v1766_v11 = vld [vmem:[%s3693_s12 + $0x30] sm:$0xff] (%p1517_p8)  ;;  %v1765_v13 = vld [vmem:[%s3693_s12 + $0x28] sm:$0xff] (%p1517_p8)  ;;  %v1764_v38 = vld [vmem:[%s3693_s12 + $0x20] sm:$0xff] (%p1517_p8) }
 0x317   : > { %2445 = vmatprep.subr.mxu1 %v2669_v41  ;;  %2478 = vmatprep.mubr.msk.f32.mxu0 %vm2670_vm10, %v2669_v41  ;;  %v1763_v21 = vld [vmem:[%s3693_s12 + $0x18] sm:$0xff]  ;;  %v2230_v23 = vld [vmem:[%s3689_s8] ss:$0 sm:$0xff]  ;;  %v1758_v51 = vld [vmem:[%s3692_s11 + $0x30] sm:$0xff] }
 0x318   : > { %2446 = vmatpush3.msra.mxu1 %v1669_v54  ;;  %2463 = vmatpush3.msra.mxu0 %v1767_v10  ;;  %v1759_v8 = vld [vmem:[%s3692_s11 + $0x38] sm:$0xff]  ;;  %v1757_v55 = vld [vmem:[%s3692_s11 + $0x28] sm:$0xff]  ;;  %v1756_v59 = vld [vmem:[%s3692_s11 + $0x20] sm:$0xff] }
 0x319   : > { %2447 = vmatprep.subr.mxu1 %v2669_v41  ;;  %2464 = vmatprep.subr.mxu0 %v2669_v41  ;;  %v1755_v0 = vld [vmem:[%s3692_s11 + $0x18] sm:$0xff]  ;;  %v1754_v5 = vld [vmem:[%s3692_s11 + $0x10] sm:$0xff]  ;;  %v1753_v12 = vld [vmem:[%s3692_s11 + $0x8] sm:$0xff] }
 0x31a   : > { %2448 = vmatpush3.msra.mxu1 %v1668_v56  ;;  %2465 = vmatpush3.msra.mxu0 %v1766_v11  ;;  %v1762_v9 = vld [vmem:[%s3693_s12 + $0x10] sm:$0xff]  ;;  %v1761_v16 = vld [vmem:[%s3693_s12 + $0x8] sm:$0xff]  ;;  %v1752_v20 = vld [vmem:[%s3692_s11] sm:$0xff] }
 0x31b   : > { %2449 = vmatprep.subr.mxu1 %v2669_v41  ;;  %2466 = vmatprep.subr.mxu0 %v2669_v41  ;;  %v1578_v24 = vld [vmem:[#allocation5] sm:$0x3]  ;;  %v1938_v52 = vld [vmem:[%s3695_s14 + $0x78] sm:$0xff]  ;;  %v1937_v35 = vld [vmem:[%s3695_s14 + $0x70] sm:$0xff] }
 0x31c   : > { %2450 = vmatpush3.msra.mxu1 %v1667_v58  ;;  %2467 = vmatpush3.msra.mxu0 %v1765_v13  ;;  %v1760_v62 = vld [vmem:[%s3693_s12] sm:$0xff]  ;;  %2019 = vst.msk [vmem:[#allocation7] sm:$0x3] %vm2018_vm11, %v1578_v24  ;;  %v1936_v37 = vld [vmem:[%s3695_s14 + $0x68] sm:$0xff]  ;;  %v1934_v29 = vld [vmem:[%s3695_s14 + $0x58] sm:$0xff] }
 0x31d   : > { %2451 = vmatprep.subr.mxu1 %v2669_v41  ;;  %2468 = vmatprep.subr.mxu0 %v2669_v41  ;;  %v2232_v25 = vld [vmem:[%s3691_s10] ss:$0 sm:$0xff]  ;;  %v1933_v36 = vld [vmem:[%s3695_s14 + $0x50] sm:$0xff]  ;;  %v1932_v39 = vld [vmem:[%s3695_s14 + $0x48] sm:$0xff] }
 0x31e   : > { %2452 = vmatpush3.msra.mxu1 %v1666_v61  ;;  %2469 = vmatpush3.msra.mxu0 %v1764_v38  ;;  %v1935_v27 = vld [vmem:[%s3695_s14 + $0x60] sm:$0xff]  ;;  %v1930_v50 = vld [vmem:[%s3695_s14 + $0x38] sm:$0xff]  ;;  %v1929_v60 = vld [vmem:[%s3695_s14 + $0x30] sm:$0xff] }
 0x31f   : > { %2453 = vmatprep.subr.mxu1 %v2669_v41  ;;  %2470 = vmatprep.subr.mxu0 %v2669_v41  ;;  %v1931_v3 = vld [vmem:[%s3695_s14 + $0x40] sm:$0xff]  ;;  %v1928_v46 = vld [vmem:[%s3695_s14 + $0x28] sm:$0xff]  ;;  %v1926_v14 = vld [vmem:[%s3695_s14 + $0x18] sm:$0xff] }
 0x320   : > { %2454 = vmatpush3.msra.mxu1 %v1665_v2  ;;  %2471 = vmatpush3.msra.mxu0 %v1763_v21  ;;  %v1927_v45 = vld [vmem:[%s3695_s14 + $0x20] sm:$0xff]  ;;  %v1925_v18 = vld [vmem:[%s3695_s14 + $0x10] sm:$0xff]  ;;  %v1924_v63 = vld [vmem:[%s3695_s14 + $0x8] sm:$0xff] }
 0x321   : > { %2455 = vmatprep.subr.mxu1 %v2669_v41  ;;  %2472 = vmatprep.subr.mxu0 %v2669_v41  ;;  %v1923_v1 = vld [vmem:[%s3695_s14] sm:$0xff] }
 0x322   : > { %2456 = vmatpush3.msra.mxu1 %v1664_v6  ;;  %2473 = vmatpush3.msra.mxu0 %v1762_v9  ;;  %v2236_v48 = vld [vmem:[%s3694_s13] ss:$0 sm:$0xff]  ;;  %v2237_v31 = vld [vmem:[#allocation6] ss:$0 sm:$0xff] }
 0x323   : > { %2457 = vmatprep.subr.mxu1 %v2669_v41  ;;  %2474 = vmatprep.subr.mxu0 %v2669_v41 }
 0x324   : > { %2458 = vmatpush3.msra.mxu1 %v1663_v7  ;;  %2475 = vmatpush3.msra.mxu0 %v1761_v16 }
 0x325   : > { %2481 = vmatprep.subr.mxu1 %v2669_v41  ;;  %2476 = vmatprep.subr.mxu0 %v2669_v41 }
 0x326   : > { %2477 = vmatpush3.msra.mxu0 %v1760_v62 }
 0x327   : > { %2500 = vmatprep.subr.mxu0 %v2669_v41 }
 0x3d5   : > { %v1658_v15 = vpop.f32.mrf.mxu1 }
 0x3d6   : > { %v1659_v26 = vadd.f32 %v2230_v23, %v1658_v15 }
 0x3d7   : > { %v2442_v30 = vpop.f32.mrf.mxu1 }
 0x3d8   : > { %v1662_v34 = vmax.f32 %v1659_v26, 0.0 }
 0x3da   : > { %2460 = vmatmul.mubr.msk.f32.vlgmr.msra.gmra.mxu1 %vm692_vm3, %v1662_v34 }
 0x3db   : > { %2482 = vmatpush3.msra.mxu1 %v1759_v8  ;;  %2497 = vmatprep.mubr.msk.f32.mxu1 %vm2670_vm10, %v2669_v41 }
 0x3dc   : > { %2483 = vmatprep.subr.mxu1 %v2669_v41 }
 0x3dd   : > { %2484 = vmatpush3.msra.mxu1 %v1758_v51 }
 0x3de   : > { %2485 = vmatprep.subr.mxu1 %v2669_v41 }
 0x3df   : > { %2486 = vmatpush3.msra.mxu1 %v1757_v55 }
 0x3e0   : > { %2487 = vmatprep.subr.mxu1 %v2669_v41 }
 0x3e1   : > { %2488 = vmatpush3.msra.mxu1 %v1756_v59 }
 0x3e2   : > { %2489 = vmatprep.subr.mxu1 %v2669_v41 }
 0x3e3   : > { %2490 = vmatpush3.msra.mxu1 %v1755_v0 }
 0x3e4   : > { %2491 = vmatprep.subr.mxu1 %v2669_v41 }
 0x3e5   : > { %2492 = vmatpush3.msra.mxu1 %v1754_v5 }
 0x3e6   : > { %2493 = vmatprep.subr.mxu1 %v2669_v41 }
 0x3e7   : > { %2494 = vmatpush3.msra.mxu1 %v1753_v12 }
 0x3e8   : > { %2495 = vmatprep.subr.mxu1 %v2669_v41 }
 0x3e9   : > { %2496 = vmatpush3.msra.mxu1 %v1752_v20 }
 0x3ea   : > { %2498 = vmatmul.mubr.msk.f32.vlgmr.msra.gmra.mxu1 %vm692_vm3, %v1578_v24 }
 0x49a   : > { %v1747_v4 = vpop.f32.mrf.mxu1 }
 0x49b   : > { %v1748_v42 = vadd.f32 %v2232_v25, %v1747_v4 }
 0x49c   : > { %v2461_v57 = vpop.f32.mrf.mxu1 }
 0x49d   : > { %v1751_v47 = vmax.f32 %v1748_v42, 0.0 }
 0x49f   : > { %2479 = vmatmul.mubr.msk.f32.vlgmr.msra.gmra.mxu0 %vm692_vm3, %v1751_v47 }
 0x4a0   : > { %2501 = vmatpush3.msra.mxu0 %v1938_v52  ;;  %2532 = vmatprep.mubr.msk.f32.mxu0 %vm2670_vm10, %v2669_v41 }
 0x4a1   : > { %2502 = vmatprep.subr.mxu0 %v2669_v41 }
 0x4a2   : > { %2503 = vmatpush3.msra.mxu0 %v1937_v35 }
 0x4a3   : > { %2504 = vmatprep.subr.mxu0 %v2669_v41 }
 0x4a4   : > { %2505 = vmatpush3.msra.mxu0 %v1936_v37 }
 0x4a5   : > { %2506 = vmatprep.subr.mxu0 %v2669_v41 }
 0x4a6   : > { %2507 = vmatpush3.msra.mxu0 %v1935_v27 }
 0x4a7   : > { %2508 = vmatprep.subr.mxu0 %v2669_v41 }
 0x4a8   : > { %2509 = vmatpush3.msra.mxu0 %v1934_v29 }
 0x4a9   : > { %2510 = vmatprep.subr.mxu0 %v2669_v41 }
 0x4aa   : > { %2511 = vmatpush3.msra.mxu0 %v1933_v36  ;;  %v1910_v22 = vpop.f32.mrf.mxu1 }
 0x4ab   : > { %2512 = vmatprep.subr.mxu0 %v2669_v41 }
 0x4ac   : > { %2513 = vmatpush3.msra.mxu0 %v1932_v39  ;;  %v2499_v17 = vpop.f32.mrf.mxu1 }
 0x4ad   : > { %2514 = vmatprep.subr.mxu0 %v2669_v41 }
 0x4ae   : > { %2515 = vmatpush3.msra.mxu0 %v1931_v3 }
 0x4af   : > { %2516 = vmatprep.subr.mxu0 %v2669_v41 }
 0x4b0   : > { %2517 = vmatpush3.msra.mxu0 %v1930_v50 }
 0x4b1   : > { %2518 = vmatprep.subr.mxu0 %v2669_v41 }
 0x4b2   : > { %2519 = vmatpush3.msra.mxu0 %v1929_v60 }
 0x4b3   : > { %2520 = vmatprep.subr.mxu0 %v2669_v41 }
 0x4b4   : > { %2521 = vmatpush3.msra.mxu0 %v1928_v46 }
 0x4b5   : > { %2522 = vmatprep.subr.mxu0 %v2669_v41 }
 0x4b6   : > { %2523 = vmatpush3.msra.mxu0 %v1927_v45 }
 0x4b7   : > { %2524 = vmatprep.subr.mxu0 %v2669_v41 }
 0x4b8   : > { %2525 = vmatpush3.msra.mxu0 %v1926_v14 }
 0x4b9   : > { %2526 = vmatprep.subr.mxu0 %v2669_v41 }
 0x4ba   : > { %2527 = vmatpush3.msra.mxu0 %v1925_v18 }
 0x4bb   : > { %2528 = vmatprep.subr.mxu0 %v2669_v41 }
 0x4bc   : > { %2529 = vmatpush3.msra.mxu0 %v1924_v63 }
 0x4bd   : > { %2530 = vmatprep.subr.mxu0 %v2669_v41 }
 0x4be   : > { %2531 = vmatpush3.msra.mxu0 %v1923_v1 }
 0x55f   : > { %v1837_v44 = vpop.f32.mrf.mxu0 }
 0x560   : > { %v1911_v49 = vadd.f32 %v1910_v22, %v1837_v44 }
 0x561   : > { %v2480_v53 = vpop.f32.mrf.mxu0 }
 0x562   : > { %v1921_v28 = vadd.f32 %v2236_v48, %v1911_v49 }
 0x564   : > { %v1922_v19 = vmax.f32 %v1921_v28, 0.0 }
 0x566   : > { %2020 = vst [vmem:[#allocation9] sm:$0x3] %v1922_v19  ;;  %2533 = vmatmul.mubr.f32.vlgmr.msra.gmra.mxu0 %v1922_v19 }
 0x626   : > { %v2012_v40 = vpop.f32.mrf.mxu0 }
 0x627   : > { %v2013_v33 = vadd.f32 %v2237_v31, %v2012_v40 }
 0x628   : > { %v2534_v32 = vpop.f32.mrf.mxu0 }
 0x629   : > { %2017 = vst.msk [vmem:[%s3697_s16] sm:$0x3] %vm2016_vm12, %v2013_v33 }
 0x62a PF: > { %s3715_s20 = sadd.s32 4294967295, %s2661_s0   ;;  %s2671_s24 = smov [#allocation7]  }
 0x62b   : > { %p3646_p10 = scmp.eq.s32.totalorder %s3715_s20, 2  ;;  %s2031_s25 = sshll.u32 %s2671_s24, 4  ;;  %s2032_s25 = int_to_ptr.vmem [resolvable:$true] %s2031_s25 }
 0x62c   : > { %s2672_s15 = smov [#allocation9]   ;;  %s2583_s23 = scalar_lea.vmem %s2032_s25, 32 }
 0x62d   : > { %s2042_s21 = sshll.u32 %s2672_s15, 4  ;;  %p2584_p11 = scmp.ne.s32.totalorder %s2032_s25, %s2583_s23  ;;  %s2043_s21 = int_to_ptr.vmem [resolvable:$true] %s2042_s21 }
 0x62e   : > { %p2590_p0 = scmp.lt.s32.totalorder %s2032_s25, %s2032_s25  ;;  %p2591_p1 = scmp.lt.s32.totalorder %s2583_s23, %s2583_s23 }
 0x62f   : > { %p2585_p12 = pnand %p2584_p11, %p3646_p10 }
 0x630   : > { %p2592_p2 = por %p2591_p1, %p2590_p0 }
 0x631   : > { %p2586_p13 = pneg %p2585_p12 }
 0x633   : > { %p2593_p3 = pnand %p2592_p2, %p2586_p13 }
 0x635   : > { %2596 = shalt.err (!%p2593_p3)
}
 0x636   : > { %2536 = dma.vmem_to_hbm [thread:$0]  (%p3646_p10), %s2032_s25, 32, %s3698_s17, [#allocation8]  }
 0x637   : > { %s2607_s28 = scalar_lea.vmem %s2043_s21, 32  ;;  %p2614_p7 = scmp.lt.s32.totalorder %s2043_s21, %s2043_s21 }
 0x638   : > { %p2608_p4 = scmp.ne.s32.totalorder %s2043_s21, %s2607_s28  ;;  %p2615_p8 = scmp.lt.s32.totalorder %s2607_s28, %s2607_s28 }
 0x63a   : > { %p2609_p5 = pnand %p2608_p4, %p3646_p10  ;;  %p2616_p9 = por %p2615_p8, %p2614_p7 }
 0x63c   : > { %p2610_p6 = pneg %p2609_p5 }
 0x63e   : > { %p2617_p11 = pnand %p2616_p9, %p2610_p6 }
 0x640   : > { %2620 = shalt.err (!%p2617_p11)
}
 0x641   : > { %2538 = dma.vmem_to_hbm [thread:$0]  (%p3646_p10), %s2043_s21, 32, %s3699_s18, [#allocation10]  }
 0x642   : > { %2644 = dma.done.wait (%p3646_p10), [#allocation8], 32  }
 0x643   : > { %2646 = vsyncadd (%p3646_p10), [#allocation8], 4294967264 }
 0x644   : > { %2648 = dma.done.wait (%p3646_p10), [#allocation10], 32  }
 0x645   : > { %2650 = vsyncadd (%p3646_p10), [#allocation10], 4294967264 }
 0x646 PF: > { %s33_s0 = sadd.s32 1, %s2661_s0   ;;  %s3717_s29 = smov %s2657_s30 }
 0x647   : > { %p30_p12 = scmp.ge.s32.totalorder %s33_s0, 5   ;;  %s3718_s30 = smov %s3720_s19 }
 0x649   :  { %32 = sbr.rel (!%p30_p12) target bundleno = 7 (0x7), region = 169 }
 0x64e   :  { %2062 = vsyncpa [#allocation8], 1 }
 0x64f   :  { %2064 = vsyncpa [#allocation8 + $0x1], 1 }
 0x650   :  { %2065 = vsyncpa [#allocation10], 1 }

</bundles_post_ra>
